<compile_context>
chip_gen: v6e
topology: v6e:2x2x1
jax: 0.10.0
libtpu: 0.0.40
codegen_flags: <defaults>
</compile_context>

<pallas_src>
import functools

import jax
import jax.numpy as jnp
from jax.experimental import pallas as pl
from jax.experimental.pallas import tpu as pltpu


def _round_up(x: int, m: int) -> int:
    return (x + m - 1) // m * m


def _choose_tm(n: int, tile_rows: int, a_strip_budget_bytes: int = 32 * 1024 * 1024) -> int:
    """Row-tile size: multiple of 16 (bf16 sublane packing), capped so the
    double-buffered bf16 A row strip (2 * TM * N * 2 B) fits a VMEM budget."""
    tm = _round_up(min(int(tile_rows), max(n, 16)), 16)
    while tm > 16 and 2 * tm * n * 2 > a_strip_budget_bytes:
        tm = max(16, (tm // 2 // 16) * 16)
    return tm


def _gin_kernel(mean_mode, eps_ref, a_ref, xhi_ref, xlo_ref, xdst_ref, *rest):
    """One destination-row tile of GINConv.

    eps_ref  : (1,)   f32 SMEM scalar (scalar prefetch)
    a_ref    : (TM, N)  bf16 adjacency row strip (dst rows of this tile)
    xhi_ref  : (N, H)   bf16 high half of features (resident)
    xlo_ref  : (N, H)   bf16 low  half of features (resident)
    xdst_ref : (TM, H)  f32 destination-node features for this tile
    [idg_ref : (TM, 1)  f32 per-destination 1/deg  -- 'mean' mode only]
    w1_ref   : (H, R),  b1_ref: (1, R)
    w2_ref   : (R, Op), b2_ref: (1, Op)   (Op = O padded to 128 lanes)
    o_ref    : (TM, Op) f32 output tile
    """
    if mean_mode:
        idg_ref, w1_ref, b1_ref, w2_ref, b2_ref, o_ref = rest
    else:
        w1_ref, b1_ref, w2_ref, b2_ref, o_ref = rest

    a = a_ref[...]  # bf16 0/1 entries -- exact

    # Neighbor sum:  A @ (x_hi + x_lo)  as two native bf16 x bf16 MXU matmuls
    # with f32 accumulation (no f32 upcast / temporary of the A strip).
    neigh = jnp.dot(a, xhi_ref[...], preferred_element_type=jnp.float32)
    neigh = neigh + jnp.dot(a, xlo_ref[...], preferred_element_type=jnp.float32)
    if mean_mode:
        # Single VPU multiply, hidden under the MXU.
        neigh = neigh * idg_ref[...]

    # GIN update on this tile's destination rows (delivered in f32).
    rst = (1.0 + eps_ref[0]) * xdst_ref[...] + neigh

    # apply_func: Linear(H -> R) + ReLU, then Linear(R -> Op), lane-dense store.
    h = jnp.dot(rst, w1_ref[...], preferred_element_type=jnp.float32) + b1_ref[...]
    h = jnp.maximum(h, 0.0)
    o_ref[...] = (jnp.dot(h, w2_ref[...], preferred_element_type=jnp.float32)
                  + b2_ref[...]).astype(o_ref.dtype)


def _build_in_specs(mean_mode, TM, N, H, R, Op, invariant_mode):
    """BlockSpecs.  `invariant_mode` (pl.Buffered(1) or None) is applied to the
    grid-invariant (resident) operands whose index_map is constant."""
    def resident(shape):
        if invariant_mode is None:
            return pl.BlockSpec(shape, lambda i, eps: (0, 0))
        return pl.BlockSpec(shape, lambda i, eps: (0, 0), pipeline_mode=invariant_mode)

    specs = [
        pl.BlockSpec((TM, N), lambda i, eps: (i, 0)),   # A row strip (pipelined)
        resident((N, H)),                               # x_hi, resident
        resident((N, H)),                               # x_lo, resident
        pl.BlockSpec((TM, H), lambda i, eps: (i, 0)),   # x_dst row strip
    ]
    if mean_mode:
        specs.append(pl.BlockSpec((TM, 1), lambda i, eps: (i, 0)))  # 1/deg strip
    specs += [
        resident((H, R)),    # w1
        resident((1, R)),    # b1
        resident((R, Op)),   # w2 (lane-padded)
        resident((1, Op)),   # b2 (lane-padded)
    ]
    return specs


def gin_conv(adj, feat, w1, b1, w2, b2, *, eps=0.0, aggregator_type="sum",
             tile_rows=512):
    """GINConv forward.

    adj : [N, N] dense adjacency (adj[i, j] = 1 for edge j -> i).  Keep it in
          bf16 outside the hot path; the cast here is a no-op in that case.
    feat: [N, H] node features.
    w1  : [H, R], b1: [1, R]   (apply_func layer 1)
    w2  : [R, O], b2: [1, O]   (apply_func layer 2)
    eps : scalar; passed to the kernel through SMEM (scalar prefetch).
    """
    N, H = feat.shape
    R = w1.shape[1]
    O = w2.shape[1]

    if aggregator_type not in ("sum", "mean"):
        raise KeyError(f"Aggregator type {aggregator_type} not supported in Pallas kernel.")
    mean_mode = aggregator_type == "mean"

    # Adjacency consumed in bf16 (exact for 0/1 edge indicators).
    adj_b = adj if adj.dtype == jnp.bfloat16 else adj.astype(jnp.bfloat16)

    feat_f = feat.astype(jnp.float32)
    # Split-precision features: x ~= x_hi + x_lo, both bf16, so the dominant
    # A @ X matmuls run at native bf16 MXU cadence with ~f32 accuracy.
    x_hi = feat_f.astype(jnp.bfloat16)
    x_lo = (feat_f - x_hi.astype(jnp.float32)).astype(jnp.bfloat16)

    TM = _choose_tm(N, tile_rows)
    Np = _round_up(N, TM)          # pad node ROWS only so the grid divides
    Op = _round_up(O, 128)         # lane-dense output
    pad = Np - N

    # Row-only padding (O(N*TM) traffic, never O(N^2)); A columns stay at N.
    a_rows = jnp.pad(adj_b, ((0, pad), (0, 0))) if pad else adj_b
    x_dst = jnp.pad(feat_f, ((0, pad), (0, 0))) if pad else feat_f

    args = [a_rows, x_hi, x_lo, x_dst]
    if mean_mode:
        deg = jnp.maximum(jnp.sum(adj_b, axis=1, dtype=jnp.float32, keepdims=True), 1.0)
        inv_deg = 1.0 / deg
        if pad:
            inv_deg = jnp.pad(inv_deg, ((0, pad), (0, 0)), constant_values=1.0)
        args.append(inv_deg)

    w1f = w1.astype(jnp.float32)
    b1f = b1.astype(jnp.float32).reshape(1, R)
    w2p = jnp.zeros((R, Op), jnp.float32).at[:, :O].set(w2.astype(jnp.float32))
    b2p = jnp.zeros((1, Op), jnp.float32).at[:, :O].set(b2.astype(jnp.float32).reshape(1, O))
    args += [w1f, b1f, w2p, b2p]

    eps_arr = jnp.asarray([eps], dtype=jnp.float32)

    cost = pl.CostEstimate(
        flops=2 * (2 * Np * N * H) + 2 * Np * H * R + 2 * Np * R * Op,
        transcendentals=0,
        bytes_accessed=(Np * N * 2                 # bf16 adjacency (dominant)
                        + 2 * N * H * 2            # x_hi + x_lo
                        + Np * H * 4               # x_dst
                        + (H * R + R + R * Op + Op) * 4
                        + Np * Op * 4),            # output
    )

    kernel = functools.partial(_gin_kernel, mean_mode)

    def run(invariant_mode):
        return pl.pallas_call(
            kernel,
            out_shape=jax.ShapeDtypeStruct((Np, Op), jnp.float32),
            grid_spec=pltpu.PrefetchScalarGridSpec(
                num_scalar_prefetch=1,           # eps -> SMEM, first kernel arg
                grid=(Np // TM,),
                in_specs=_build_in_specs(mean_mode, TM, N, H, R, Op, invariant_mode),
                out_specs=pl.BlockSpec((TM, Op), lambda i, eps: (i, 0)),
            ),
            compiler_params=pltpu.CompilerParams(
                dimension_semantics=("parallel",),    # row tiles are independent
                vmem_limit_bytes=64 * 1024 * 1024,    # explicit scoped VMEM limit
            ),
            cost_estimate=cost,
        )(eps_arr, *args)

    try:
        # Single-buffer the grid-invariant operands (their index_map is
        # constant, so double-buffering only doubles resident VMEM — the
        # binding constraint on v7x's 64 MiB VMEM).
        out = run(pl.Buffered(1))
    except Exception:
        # Fallback for jax versions without BlockSpec(pipeline_mode=...).
        out = run(None)

    # Padded rows/lanes are non-zero by construction -- keep this slice.
    return out[:N, :O]


def reference_gin(adj, feat, w1, b1, w2, b2, *, eps=0.0, aggregator_type="sum"):
    hp = jax.lax.Precision.HIGHEST
    a = adj.astype(jnp.float32)
    if aggregator_type == "mean":
        a = a / jnp.maximum(a.sum(axis=1, keepdims=True), 1.0)
    x = feat.astype(jnp.float32)
    neigh = jnp.dot(a, x, precision=hp)
    rst = (1.0 + eps) * x + neigh
    h = jnp.maximum(jnp.dot(rst, w1, precision=hp) + b1, 0.0)
    return jnp.dot(h, w2, precision=hp) + b2


if __name__ == "__main__":
    key = jax.random.PRNGKey(0)
    k_adj1, k_feat1, k_adj2, k_feat2, k_w1, k_w2 = jax.random.split(key, 6)

    # Shapes consistent with the module defaults: hidden=32, rank=32, out=8.
    H, R, O = 32, 32, 8

    # Xavier-uniform-style init for the apply_func MLP weights.
    lim1 = (6.0 / (H + R)) ** 0.5
    lim2 = (6.0 / (R + O)) ** 0.5
    w1 = jax.random.uniform(k_w1, (H, R), minval=-lim1, maxval=lim1, dtype=jnp.float32)
    b1 = jnp.zeros((1, R), dtype=jnp.float32)
    w2 = jax.random.uniform(k_w2, (R, O), minval=-lim2, maxval=lim2, dtype=jnp.float32)
    b2 = jnp.zeros((1, O), dtype=jnp.float32)

    # --- Test 1: 'sum' aggregator, eps=0, N divisible by the row tile --------
    N1 = 256
    adj1 = (jax.random.uniform(k_adj1, (N1, N1)) < 0.1).astype(jnp.bfloat16)  # 0/1, exact in bf16
    feat1 = jax.random.normal(k_feat1, (N1, H), dtype=jnp.float32)
    out1 = jax.block_until_ready(
        gin_conv(adj1, feat1, w1, b1, w2, b2, eps=0.0, aggregator_type="sum", tile_rows=128))
    ref1 = reference_gin(adj1, feat1, w1, b1, w2, b2, eps=0.0, aggregator_type="sum")
    assert out1.shape == (N1, O)
    assert jnp.allclose(out1, ref1, atol=2e-3, rtol=2e-3), "mismatch vs reference (sum)"

    # --- Test 2: 'mean' aggregator, eps=0.25, N NOT divisible by the tile ----
    # Exercises the row-pad path, the inv_deg operand and the SMEM eps.
    N2 = 192
    adj2 = (jax.random.uniform(k_adj2, (N2, N2)) < 0.1).astype(jnp.bfloat16)
    feat2 = jax.random.normal(k_feat2, (N2, H), dtype=jnp.float32)
    out2 = jax.block_until_ready(
        gin_conv(adj2, feat2, w1, b1, w2, b2, eps=0.25, aggregator_type="mean", tile_rows=128))
    ref2 = reference_gin(adj2, feat2, w1, b1, w2, b2, eps=0.25, aggregator_type="mean")
    assert out2.shape == (N2, O)
    assert jnp.allclose(out2, ref2, atol=2e-3, rtol=2e-3), "mismatch vs reference (mean)"

    print("KERNEL_OK")
</pallas_src>

<mosaic_0001>
module attributes {stable_mosaic.version = 11 : i64} {
  func.func @_gin_kernel(%arg0: i32, %arg1: memref<1xf32, #tpu.memory_space<smem>>, %arg2: memref<128x256xbf16, #tpu.memory_space<vmem>>, %arg3: memref<256x32xbf16, #tpu.memory_space<vmem>>, %arg4: memref<256x32xbf16, #tpu.memory_space<vmem>>, %arg5: memref<128x32xf32, #tpu.memory_space<vmem>>, %arg6: memref<32x32xf32, #tpu.memory_space<vmem>>, %arg7: memref<1x32xf32, #tpu.memory_space<vmem>>, %arg8: memref<32x128xf32, #tpu.memory_space<vmem>>, %arg9: memref<1x128xf32, #tpu.memory_space<vmem>>, %arg10: memref<128x128xf32, #tpu.memory_space<vmem>>) attributes {dimension_semantics = [#tpu.dimension_semantics<parallel>], iteration_bounds = array<i64: 2>, scalar_prefetch = 1 : i64, scratch_operands = 0 : i64, tpu.core_type = #tpu.core_type<tc>, window_params = [{transform_indices = @transform_0, window_bounds = array<i64: 128, 256>}, {pipeline_mode = #tpu.pipeline_mode<synchronous>, transform_indices = @transform_1, window_bounds = array<i64: 256, 32>}, {pipeline_mode = #tpu.pipeline_mode<synchronous>, transform_indices = @transform_2, window_bounds = array<i64: 256, 32>}, {transform_indices = @transform_3, window_bounds = array<i64: 128, 32>}, {pipeline_mode = #tpu.pipeline_mode<synchronous>, transform_indices = @transform_4, window_bounds = array<i64: 32, 32>}, {pipeline_mode = #tpu.pipeline_mode<synchronous>, transform_indices = @transform_5, window_bounds = array<i64: 1, 32>}, {pipeline_mode = #tpu.pipeline_mode<synchronous>, transform_indices = @transform_6, window_bounds = array<i64: 32, 128>}, {pipeline_mode = #tpu.pipeline_mode<synchronous>, transform_indices = @transform_7, window_bounds = array<i64: 1, 128>}, {transform_indices = @transform_8, window_bounds = array<i64: 128, 128>}]} {
    %c0 = arith.constant 0 : index
    %c0_0 = arith.constant 0 : index
    %0 = vector.load %arg2[%c0, %c0_0] : memref<128x256xbf16, #tpu.memory_space<vmem>>, vector<128x256xbf16>
    %c0_1 = arith.constant 0 : index
    %c0_2 = arith.constant 0 : index
    %1 = vector.load %arg3[%c0_1, %c0_2] : memref<256x32xbf16, #tpu.memory_space<vmem>>, vector<256x32xbf16>
    %cst = arith.constant dense<0.000000e+00> : vector<128x32xf32>
    %2 = tpu.matmul %0, %1, %cst {dimension_numbers = #tpu.dot_dimension_numbers<[1], [0], [0], [1], [0, 0, 1, 1], [], []>} : vector<128x256xbf16>, vector<256x32xbf16>, vector<128x32xf32> -> vector<128x32xf32>
    %c0_3 = arith.constant 0 : index
    %c0_4 = arith.constant 0 : index
    %3 = vector.load %arg4[%c0_3, %c0_4] : memref<256x32xbf16, #tpu.memory_space<vmem>>, vector<256x32xbf16>
    %cst_5 = arith.constant dense<0.000000e+00> : vector<128x32xf32>
    %4 = tpu.matmul %0, %3, %cst_5 {dimension_numbers = #tpu.dot_dimension_numbers<[1], [0], [0], [1], [0, 0, 1, 1], [], []>} : vector<128x256xbf16>, vector<256x32xbf16>, vector<128x32xf32> -> vector<128x32xf32>
    %5 = arith.addf %2, %4 : vector<128x32xf32>
    %c0_6 = arith.constant 0 : index
    %6 = memref.load %arg1[%c0_6] : memref<1xf32, #tpu.memory_space<smem>>
    %cst_7 = arith.constant 1.000000e+00 : f32
    %7 = arith.addf %cst_7, %6 : f32
    %c0_8 = arith.constant 0 : index
    %c0_9 = arith.constant 0 : index
    %8 = vector.load %arg5[%c0_8, %c0_9] : memref<128x32xf32, #tpu.memory_space<vmem>>, vector<128x32xf32>
    %9 = vector.broadcast %7 : f32 to vector<128x32xf32>
    %10 = arith.mulf %9, %8 : vector<128x32xf32>
    %11 = arith.addf %10, %5 : vector<128x32xf32>
    %c0_10 = arith.constant 0 : index
    %c0_11 = arith.constant 0 : index
    %12 = vector.load %arg6[%c0_10, %c0_11] : memref<32x32xf32, #tpu.memory_space<vmem>>, vector<32x32xf32>
    %cst_12 = arith.constant dense<0.000000e+00> : vector<128x32xf32>
    %13 = tpu.matmul %11, %12, %cst_12 {dimension_numbers = #tpu.dot_dimension_numbers<[1], [0], [0], [1], [0, 0, 1, 1], [], []>} : vector<128x32xf32>, vector<32x32xf32>, vector<128x32xf32> -> vector<128x32xf32>
    %c0_13 = arith.constant 0 : index
    %c0_14 = arith.constant 0 : index
    %14 = vector.load %arg7[%c0_13, %c0_14] : memref<1x32xf32, #tpu.memory_space<vmem>>, vector<1x32xf32>
    %15 = vector.broadcast %14 : vector<1x32xf32> to vector<128x32xf32>
    %16 = arith.addf %13, %15 : vector<128x32xf32>
    %cst_15 = arith.constant 0.000000e+00 : f32
    %17 = vector.broadcast %cst_15 : f32 to vector<128x32xf32>
    %18 = arith.maximumf %16, %17 : vector<128x32xf32>
    %c0_16 = arith.constant 0 : index
    %c0_17 = arith.constant 0 : index
    %19 = vector.load %arg8[%c0_16, %c0_17] : memref<32x128xf32, #tpu.memory_space<vmem>>, vector<32x128xf32>
    %cst_18 = arith.constant dense<0.000000e+00> : vector<128x128xf32>
    %20 = tpu.matmul %18, %19, %cst_18 {dimension_numbers = #tpu.dot_dimension_numbers<[1], [0], [0], [1], [0, 0, 1, 1], [], []>} : vector<128x32xf32>, vector<32x128xf32>, vector<128x128xf32> -> vector<128x128xf32>
    %c0_19 = arith.constant 0 : index
    %c0_20 = arith.constant 0 : index
    %21 = vector.load %arg9[%c0_19, %c0_20] : memref<1x128xf32, #tpu.memory_space<vmem>>, vector<1x128xf32>
    %22 = vector.broadcast %21 : vector<1x128xf32> to vector<128x128xf32>
    %23 = arith.addf %20, %22 : vector<128x128xf32>
    %c0_21 = arith.constant 0 : index
    %c0_22 = arith.constant 0 : index
    %24 = vector.load %arg10[%c0_21, %c0_22] : memref<128x128xf32, #tpu.memory_space<vmem>>, vector<128x128xf32>
    tpu.vector_store %arg10[%c0_21, %c0_22], %23 {strides = array<i32>} : memref<128x128xf32, #tpu.memory_space<vmem>>, vector<128x128xf32>,
    return
  }
  func.func @transform_0(%arg0: i32, %arg1: memref<1xf32, #tpu.memory_space<smem>>) -> (i32, i32) {
    %c0_i32 = arith.constant 0 : i32
    %c0_i32_0 = arith.constant 0 : i32
    return %arg0, %c0_i32 : i32, i32
  }
  func.func @transform_1(%arg0: i32, %arg1: memref<1xf32, #tpu.memory_space<smem>>) -> (i32, i32) {
    %c0_i32 = arith.constant 0 : i32
    %c0_i32_0 = arith.constant 0 : i32
    %c0_i32_1 = arith.constant 0 : i32
    return %c0_i32, %c0_i32_0 : i32, i32
  }
  func.func @transform_2(%arg0: i32, %arg1: memref<1xf32, #tpu.memory_space<smem>>) -> (i32, i32) {
    %c0_i32 = arith.constant 0 : i32
    %c0_i32_0 = arith.constant 0 : i32
    %c0_i32_1 = arith.constant 0 : i32
    return %c0_i32, %c0_i32_0 : i32, i32
  }
  func.func @transform_3(%arg0: i32, %arg1: memref<1xf32, #tpu.memory_space<smem>>) -> (i32, i32) {
    %c0_i32 = arith.constant 0 : i32
    %c0_i32_0 = arith.constant 0 : i32
    return %arg0, %c0_i32 : i32, i32
  }
  func.func @transform_4(%arg0: i32, %arg1: memref<1xf32, #tpu.memory_space<smem>>) -> (i32, i32) {
    %c0_i32 = arith.constant 0 : i32
    %c0_i32_0 = arith.constant 0 : i32
    %c0_i32_1 = arith.constant 0 : i32
    return %c0_i32, %c0_i32_0 : i32, i32
  }
  func.func @transform_5(%arg0: i32, %arg1: memref<1xf32, #tpu.memory_space<smem>>) -> (i32, i32) {
    %c0_i32 = arith.constant 0 : i32
    %c0_i32_0 = arith.constant 0 : i32
    %c0_i32_1 = arith.constant 0 : i32
    return %c0_i32, %c0_i32_0 : i32, i32
  }
  func.func @transform_6(%arg0: i32, %arg1: memref<1xf32, #tpu.memory_space<smem>>) -> (i32, i32) {
    %c0_i32 = arith.constant 0 : i32
    %c0_i32_0 = arith.constant 0 : i32
    %c0_i32_1 = arith.constant 0 : i32
    return %c0_i32, %c0_i32_0 : i32, i32
  }
  func.func @transform_7(%arg0: i32, %arg1: memref<1xf32, #tpu.memory_space<smem>>) -> (i32, i32) {
    %c0_i32 = arith.constant 0 : i32
    %c0_i32_0 = arith.constant 0 : i32
    %c0_i32_1 = arith.constant 0 : i32
    return %c0_i32, %c0_i32_0 : i32, i32
  }
  func.func @transform_8(%arg0: i32, %arg1: memref<1xf32, #tpu.memory_space<smem>>) -> (i32, i32) {
    %c0_i32 = arith.constant 0 : i32
    %c0_i32_0 = arith.constant 0 : i32
    return %arg0, %c0_i32 : i32, i32
  }
}

module attributes {stable_mosaic.version = 11 : i64} {
  func.func @_gin_kernel(%arg0: i32, %arg1: memref<1xf32, #tpu.memory_space<smem>>, %arg2: memref<128x256xbf16, #tpu.memory_space<vmem>>, %arg3: memref<256x32xbf16, #tpu.memory_space<vmem>>, %arg4: memref<256x32xbf16, #tpu.memory_space<vmem>>, %arg5: memref<128x32xf32, #tpu.memory_space<vmem>>, %arg6: memref<32x32xf32, #tpu.memory_space<vmem>>, %arg7: memref<1x32xf32, #tpu.memory_space<vmem>>, %arg8: memref<32x128xf32, #tpu.memory_space<vmem>>, %arg9: memref<1x128xf32, #tpu.memory_space<vmem>>, %arg10: memref<128x128xf32, #tpu.memory_space<vmem>>) attributes {dimension_semantics = [#tpu.dimension_semantics<parallel>], iteration_bounds = array<i64: 2>, scalar_prefetch = 1 : i64, scratch_operands = 0 : i64, tpu.core_type = #tpu.core_type<tc>, window_params = [{transform_indices = @transform_0, window_bounds = array<i64: 128, 256>}, {pipeline_mode = #tpu.pipeline_mode<synchronous>, transform_indices = @transform_1, window_bounds = array<i64: 256, 32>}, {pipeline_mode = #tpu.pipeline_mode<synchronous>, transform_indices = @transform_2, window_bounds = array<i64: 256, 32>}, {transform_indices = @transform_3, window_bounds = array<i64: 128, 32>}, {pipeline_mode = #tpu.pipeline_mode<synchronous>, transform_indices = @transform_4, window_bounds = array<i64: 32, 32>}, {pipeline_mode = #tpu.pipeline_mode<synchronous>, transform_indices = @transform_5, window_bounds = array<i64: 1, 32>}, {pipeline_mode = #tpu.pipeline_mode<synchronous>, transform_indices = @transform_6, window_bounds = array<i64: 32, 128>}, {pipeline_mode = #tpu.pipeline_mode<synchronous>, transform_indices = @transform_7, window_bounds = array<i64: 1, 128>}, {transform_indices = @transform_8, window_bounds = array<i64: 128, 128>}]} {
    %c0 = arith.constant 0 : index
    %c0_0 = arith.constant 0 : index
    %0 = vector.load %arg2[%c0, %c0_0] : memref<128x256xbf16, #tpu.memory_space<vmem>>, vector<128x256xbf16>
    %c0_1 = arith.constant 0 : index
    %c0_2 = arith.constant 0 : index
    %1 = vector.load %arg3[%c0_1, %c0_2] : memref<256x32xbf16, #tpu.memory_space<vmem>>, vector<256x32xbf16>
    %cst = arith.constant dense<0.000000e+00> : vector<128x32xf32>
    %2 = tpu.matmul %0, %1, %cst {dimension_numbers = #tpu.dot_dimension_numbers<[1], [0], [0], [1], [0, 0, 1, 1], [], []>} : vector<128x256xbf16>, vector<256x32xbf16>, vector<128x32xf32> -> vector<128x32xf32>
    %c0_3 = arith.constant 0 : index
    %c0_4 = arith.constant 0 : index
    %3 = vector.load %arg4[%c0_3, %c0_4] : memref<256x32xbf16, #tpu.memory_space<vmem>>, vector<256x32xbf16>
    %cst_5 = arith.constant dense<0.000000e+00> : vector<128x32xf32>
    %4 = tpu.matmul %0, %3, %cst_5 {dimension_numbers = #tpu.dot_dimension_numbers<[1], [0], [0], [1], [0, 0, 1, 1], [], []>} : vector<128x256xbf16>, vector<256x32xbf16>, vector<128x32xf32> -> vector<128x32xf32>
    %5 = arith.addf %2, %4 : vector<128x32xf32>
    %c0_6 = arith.constant 0 : index
    %6 = memref.load %arg1[%c0_6] : memref<1xf32, #tpu.memory_space<smem>>
    %cst_7 = arith.constant 1.000000e+00 : f32
    %7 = arith.addf %cst_7, %6 : f32
    %c0_8 = arith.constant 0 : index
    %c0_9 = arith.constant 0 : index
    %8 = vector.load %arg5[%c0_8, %c0_9] : memref<128x32xf32, #tpu.memory_space<vmem>>, vector<128x32xf32>
    %9 = vector.broadcast %7 : f32 to vector<128x32xf32>
    %10 = arith.mulf %9, %8 : vector<128x32xf32>
    %11 = arith.addf %10, %5 : vector<128x32xf32>
    %c0_10 = arith.constant 0 : index
    %c0_11 = arith.constant 0 : index
    %12 = vector.load %arg6[%c0_10, %c0_11] : memref<32x32xf32, #tpu.memory_space<vmem>>, vector<32x32xf32>
    %cst_12 = arith.constant dense<0.000000e+00> : vector<128x32xf32>
    %13 = tpu.matmul %11, %12, %cst_12 {dimension_numbers = #tpu.dot_dimension_numbers<[1], [0], [0], [1], [0, 0, 1, 1], [], []>} : vector<128x32xf32>, vector<32x32xf32>, vector<128x32xf32> -> vector<128x32xf32>
    %c0_13 = arith.constant 0 : index
    %c0_14 = arith.constant 0 : index
    %14 = vector.load %arg7[%c0_13, %c0_14] : memref<1x32xf32, #tpu.memory_space<vmem>>, vector<1x32xf32>
    %15 = vector.broadcast %14 : vector<1x32xf32> to vector<128x32xf32>
    %16 = arith.addf %13, %15 : vector<128x32xf32>
    %cst_15 = arith.constant 0.000000e+00 : f32
    %17 = vector.broadcast %cst_15 : f32 to vector<128x32xf32>
    %18 = arith.maximumf %16, %17 : vector<128x32xf32>
    %c0_16 = arith.constant 0 : index
    %c0_17 = arith.constant 0 : index
    %19 = vector.load %arg8[%c0_16, %c0_17] : memref<32x128xf32, #tpu.memory_space<vmem>>, vector<32x128xf32>
    %cst_18 = arith.constant dense<0.000000e+00> : vector<128x128xf32>
    %20 = tpu.matmul %18, %19, %cst_18 {dimension_numbers = #tpu.dot_dimension_numbers<[1], [0], [0], [1], [0, 0, 1, 1], [], []>} : vector<128x32xf32>, vector<32x128xf32>, vector<128x128xf32> -> vector<128x128xf32>
    %c0_19 = arith.constant 0 : index
    %c0_20 = arith.constant 0 : index
    %21 = vector.load %arg9[%c0_19, %c0_20] : memref<1x128xf32, #tpu.memory_space<vmem>>, vector<1x128xf32>
    %22 = vector.broadcast %21 : vector<1x128xf32> to vector<128x128xf32>
    %23 = arith.addf %20, %22 : vector<128x128xf32>
    %c0_21 = arith.constant 0 : index
    %c0_22 = arith.constant 0 : index
    %24 = vector.load %arg10[%c0_21, %c0_22] : memref<128x128xf32, #tpu.memory_space<vmem>>, vector<128x128xf32>
    tpu.vector_store %arg10[%c0_21, %c0_22], %23 {strides = array<i32>} : memref<128x128xf32, #tpu.memory_space<vmem>>, vector<128x128xf32>,
    return
  }
  func.func @transform_0(%arg0: i32, %arg1: memref<1xf32, #tpu.memory_space<smem>>) -> (i32, i32) {
    %c0_i32 = arith.constant 0 : i32
    %c0_i32_0 = arith.constant 0 : i32
    return %arg0, %c0_i32 : i32, i32
  }
  func.func @transform_1(%arg0: i32, %arg1: memref<1xf32, #tpu.memory_space<smem>>) -> (i32, i32) {
    %c0_i32 = arith.constant 0 : i32
    %c0_i32_0 = arith.constant 0 : i32
    %c0_i32_1 = arith.constant 0 : i32
    return %c0_i32, %c0_i32_0 : i32, i32
  }
  func.func @transform_2(%arg0: i32, %arg1: memref<1xf32, #tpu.memory_space<smem>>) -> (i32, i32) {
    %c0_i32 = arith.constant 0 : i32
    %c0_i32_0 = arith.constant 0 : i32
    %c0_i32_1 = arith.constant 0 : i32
    return %c0_i32, %c0_i32_0 : i32, i32
  }
  func.func @transform_3(%arg0: i32, %arg1: memref<1xf32, #tpu.memory_space<smem>>) -> (i32, i32) {
    %c0_i32 = arith.constant 0 : i32
    %c0_i32_0 = arith.constant 0 : i32
    return %arg0, %c0_i32 : i32, i32
  }
  func.func @transform_4(%arg0: i32, %arg1: memref<1xf32, #tpu.memory_space<smem>>) -> (i32, i32) {
    %c0_i32 = arith.constant 0 : i32
    %c0_i32_0 = arith.constant 0 : i32
    %c0_i32_1 = arith.constant 0 : i32
    return %c0_i32, %c0_i32_0 : i32, i32
  }
  func.func @transform_5(%arg0: i32, %arg1: memref<1xf32, #tpu.memory_space<smem>>) -> (i32, i32) {
    %c0_i32 = arith.constant 0 : i32
    %c0_i32_0 = arith.constant 0 : i32
    %c0_i32_1 = arith.constant 0 : i32
    return %c0_i32, %c0_i32_0 : i32, i32
  }
  func.func @transform_6(%arg0: i32, %arg1: memref<1xf32, #tpu.memory_space<smem>>) -> (i32, i32) {
    %c0_i32 = arith.constant 0 : i32
    %c0_i32_0 = arith.constant 0 : i32
    %c0_i32_1 = arith.constant 0 : i32
    return %c0_i32, %c0_i32_0 : i32, i32
  }
  func.func @transform_7(%arg0: i32, %arg1: memref<1xf32, #tpu.memory_space<smem>>) -> (i32, i32) {
    %c0_i32 = arith.constant 0 : i32
    %c0_i32_0 = arith.constant 0 : i32
    %c0_i32_1 = arith.constant 0 : i32
    return %c0_i32, %c0_i32_0 : i32, i32
  }
  func.func @transform_8(%arg0: i32, %arg1: memref<1xf32, #tpu.memory_space<smem>>) -> (i32, i32) {
    %c0_i32 = arith.constant 0 : i32
    %c0_i32_0 = arith.constant 0 : i32
    return %arg0, %c0_i32 : i32, i32
  }
}

</mosaic_0001>

<bundles_post_ra>
// kernel: tpu_custom_call.1
= control target key start
LH: loop header
LB: loop body
LE: loop exit
PB: predicated region body
PF: predicated region fallthrough
CT: control target
= control target key end

     0   :  { %s2353_s0 = inlined_call_operand.<no memory space> [shape: f32[1], index: 0, kind: input, shape index: {}]   ;;  %s2354_s1 = inlined_call_operand.vmem [shape: bf16[256,256], index: 1, kind: input, shape index: {}]   ;;  %s2355_s2 = inlined_call_operand.vmem [shape: bf16[256,32], index: 2, kind: input, shape index: {}]   ;;  %s2356_s3 = inlined_call_operand.vmem [shape: bf16[256,32], index: 3, kind: input, shape index: {}]   ;;  %s2357_s4 = inlined_call_operand.vmem [shape: f32[256,32], index: 4, kind: input, shape index: {}]   ;;  %s2358_s5 = inlined_call_operand.vmem [shape: f32[32,32], index: 5, kind: input, shape index: {}]   ;;  %s2359_s6 = inlined_call_operand.vmem [shape: f32[1,32], index: 6, kind: input, shape index: {}]   ;;  %s2360_s7 = inlined_call_operand.vmem [shape: f32[32,128], index: 7, kind: input, shape index: {}]   ;;  %s2361_s8 = inlined_call_operand.vmem [shape: f32[1,128], index: 8, kind: input, shape index: {}]   ;;  %s2362_s9 = inlined_call_operand.hbm [shape: f32[256,128], index: 9, kind: output, shape index: {}]  }
   0x1   :  { %14 = sst [smem:[#allocation3]] %s2353_s0 }
   0x2   :  { %15 = vsyncpa [#allocation5], 0 }
   0x3   :  { %17 = vsyncpa [#allocation5 + $0x1], 0  ;;  %s2007_s11 = smov 0   ;;  %s2009_s12 = smov 0  }
   0x4   :  { %s2011_s13 = smov 0   ;;  %s2013_s14 = smov 0  }
   0x5 LB: > { %s2028_s0 = sadd.s32 4294967295, %s1949_s14   ;;  %s1461_s15 = sadd.s32 4294967294, %s1949_s14   ;;  %s1949_s14 = sphi %s2013_s14, %s2368_s14   ;;  %s1945_s13 = sphi %s2011_s13, %s2367_s13   ;;  %s1941_s12 = sphi %s2009_s12, %s2366_s12   ;;  %s1937_s11 = sphi %s2007_s11, %s2365_s11  }
   0x6   : > { %s2032_s16 = sadd.s32 1, %s1949_s14   ;;  %s208_s17 = sadd.s32 1, %s1945_s13 }
   0x7   : > { %s205_s18 = ssub.s32 %s1949_s14, %s2032_s16  ;;  %p218_p0 = scmp.ne.s32.totalorder %s1945_s13, %s1941_s12 }
   0x8   : > { %p206_p1 = scmp.eq.s32.totalorder %s205_s18, 0  ;;  %p219_p2 = scmp.eq.s32.totalorder %s2028_s0, 1 }
   0x9   : > { %p224_p3 = scmp.ne.s32.totalorder %s1941_s12, %s1937_s11  ;;  %p225_p4 = scmp.eq.s32.totalorder %s1461_s15, 1 }
   0xa   : > { %s2043_s19 = scalar_select %p206_p1, %s1945_s13, %s208_s17  }
   0xb   : > { %p2045_p5 = por %p219_p2, %p218_p0  ;;  %p2049_p6 = por %p225_p4, %p224_p3 }
   0xc   : > { %p1464_p7 = scmp.ge.s32.totalorder %s1949_s14, 1  ;;  %p280_p8 = scmp.lt.s32.totalorder %s1949_s14, 3 }
   0xe   : > { %p281_p9 = pnand %p1464_p7, %p280_p8 }
   0xf   : > { %s1466_s28 = sshll.u32 (!%p281_p9), %s2028_s0, 4  ;;  %s881_s10 = sld [smem:[#allocation3]] (!%p281_p9) }
  0x10   : > { %284 = sbr.rel (%p281_p9) target bundleno = 728 (0x2d8), region = 52  ;;  %p321_p10 = scmp.lt.s32.totalorder (!%p281_p9), %s1466_s28, 31 }
  0x11   : > { %s1559_s18 = sshll.u32 (!%p281_p9), %s2028_s0, 11  ;;  %s1951_s27 = smov (!%p281_p9), [#allocation4]  }
  0x12   : > { %s2305_s24 = scalar_lea.hbm (!%p281_p9), %s2362_s9, %s1559_s18  ;;  %s1893_s29 = sshll.u32 (!%p281_p9), %s1951_s27, 4  ;;  %s1894_s29 = int_to_ptr.vmem [resolvable:$false] %s1893_s29 }
  0x15   : > { %v1833_v0 = vld [vmem:[%s2356_s3 + $0x78] sm:$0xff]   ;;  %v1837_v4 = vld [vmem:[%s2356_s3 + $0x70] sm:$0xff]   ;;  %v1841_v8 = vld [vmem:[%s2356_s3 + $0x68] sm:$0xff]   ;;  %s2370_s28 = smov (!%p321_p10, %s1466_s28), 31  ;;  %s882_s15 = sadd.f32 1.0, %s881_s10  ;;  %vm943_vm0 = vcmask 261120  }
  0x16   : > { %v1834_v1 = vld [vmem:[%s2355_s2 + $0x78] sm:$0xff]   ;;  %1560 = vmatprep.subr.bf16.mxu0 %v1833_v0  ;;  %v1838_v5 = vld [vmem:[%s2355_s2 + $0x70] sm:$0xff]   ;;  %v1842_v9 = vld [vmem:[%s2355_s2 + $0x68] sm:$0xff]   ;;  %s1558_s26 = sshll.u32 %s2370_s28, 3 }
  0x17   : > { %v1835_v2 = vld [vmem:[%s2356_s3 + $0x38] sm:$0xff]   ;;  %1624 = vmatprep.subr.bf16.mxu1 %v1834_v1  ;;  %v1839_v6 = vld [vmem:[%s2356_s3 + $0x30] sm:$0xff]   ;;  %v1843_v10 = vld [vmem:[%s2356_s3 + $0x28] sm:$0xff]   ;;  %s2154_s23 = scalar_lea.vmem %s2354_s1, %s1558_s26  ;;  %s2201_s22 = scalar_lea.vmem %s2357_s4, %s1558_s26  ;;  %v2204_v57 = vstv %s882_s15 }
  0x18   : > { %v1836_v3 = vld [vmem:[%s2355_s2 + $0x38] sm:$0xff]   ;;  %1561 = vmatpush3.bf16.msra.mxu0 %v1835_v2  ;;  %v1840_v7 = vld [vmem:[%s2355_s2 + $0x30] sm:$0xff]   ;;  %v1844_v11 = vld [vmem:[%s2355_s2 + $0x28] sm:$0xff]  }
  0x19   : > { %1625 = vmatpush3.bf16.msra.mxu1 %v1836_v3  ;;  %1562 = vmatprep.subr.bf16.mxu0 %v1837_v4  ;;  %v1845_v12 = vld [vmem:[%s2356_s3 + $0x60] sm:$0xff]   ;;  %v1849_v16 = vld [vmem:[%s2356_s3 + $0x58] sm:$0xff]   ;;  %v1853_v20 = vld [vmem:[%s2356_s3 + $0x50] sm:$0xff]  }
  0x1a   : > { %1626 = vmatprep.subr.bf16.mxu1 %v1838_v5  ;;  %v1846_v13 = vld [vmem:[%s2355_s2 + $0x60] sm:$0xff]   ;;  %v1850_v17 = vld [vmem:[%s2355_s2 + $0x58] sm:$0xff]   ;;  %v1854_v21 = vld [vmem:[%s2355_s2 + $0x50] sm:$0xff]  }
  0x1b   : > { %v1847_v14 = vld [vmem:[%s2356_s3 + $0x20] sm:$0xff]   ;;  %v1851_v18 = vld [vmem:[%s2356_s3 + $0x18] sm:$0xff]   ;;  %v1855_v22 = vld [vmem:[%s2356_s3 + $0x10] sm:$0xff]  }
  0x1c   : > { %1563 = vmatpush3.bf16.msra.mxu0 %v1839_v6  ;;  %v1848_v15 = vld [vmem:[%s2355_s2 + $0x20] sm:$0xff]   ;;  %v1852_v19 = vld [vmem:[%s2355_s2 + $0x18] sm:$0xff]   ;;  %v1856_v23 = vld [vmem:[%s2355_s2 + $0x10] sm:$0xff]  }
  0x1d   : > { %1627 = vmatpush3.bf16.msra.mxu1 %v1840_v7  ;;  %1564 = vmatprep.subr.bf16.mxu0 %v1841_v8  ;;  %v1857_v24 = vld [vmem:[%s2356_s3 + $0x48] sm:$0xff]   ;;  %v1861_v28 = vld [vmem:[%s2356_s3 + $0x40] sm:$0xff]   ;;  %v1868_v34 = vld [vmem:[%s2154_s23 + $0x14] ss:$8 sps:$4 sm:$0xff]  }
  0x1e   : > { %1628 = vmatprep.subr.bf16.mxu1 %v1842_v9  ;;  %v1858_v25 = vld [vmem:[%s2355_s2 + $0x48] sm:$0xff]   ;;  %v1862_v29 = vld [vmem:[%s2355_s2 + $0x40] sm:$0xff]   ;;  %v1870_v35 = vld [vmem:[%s2154_s23 + $0x10] ss:$8 sps:$4 sm:$0xff]  }
  0x1f   : > { %v1859_v26 = vld [vmem:[%s2356_s3 + $0x8] sm:$0xff]   ;;  %v1863_v30 = vld [vmem:[%s2356_s3] sm:$0xff]   ;;  %v935_v37 = vld [vmem:[%s2358_s5 + $0x18] sm:$0xff] }
  0x20   : > { %1565 = vmatpush3.bf16.msra.mxu0 %v1843_v10  ;;  %v1860_v27 = vld [vmem:[%s2355_s2 + $0x8] sm:$0xff]   ;;  %v1864_v31 = vld [vmem:[%s2355_s2] sm:$0xff]   ;;  %v934_v38 = vld [vmem:[%s2358_s5 + $0x10] sm:$0xff] }
  0x21   : > { %1629 = vmatpush3.bf16.msra.mxu1 %v1844_v11  ;;  %1566 = vmatprep.subr.bf16.mxu0 %v1845_v12  ;;  %v1865_v32 = vld [vmem:[%s2154_s23] ss:$8 sps:$4 sm:$0xff]   ;;  %v1867_v33 = vld [vmem:[%s2154_s23 + $0x4] ss:$8 sps:$4 sm:$0xff]   ;;  %v1874_v40 = vld [vmem:[%s2154_s23 + $0x34] ss:$8 sps:$4 sm:$0xff]  }
  0x22   : > { %1630 = vmatprep.subr.bf16.mxu1 %v1846_v13  ;;  %623 = vmatprep.mubr.bf16.mxu0 %v1867_v33  ;;  %v1871_v36 = vld [vmem:[%s2154_s23 + $0x24] ss:$8 sps:$4 sm:$0xff]   ;;  %v1873_v39 = vld [vmem:[%s2154_s23 + $0x20] ss:$8 sps:$4 sm:$0xff]   ;;  %v1876_v41 = vld [vmem:[%s2154_s23 + $0x30] ss:$8 sps:$4 sm:$0xff]  }
  0x23   : > { %816 = vmatprep.mubr.bf16.mxu1 %v1867_v33  ;;  %v1877_v42 = vld [vmem:[%s2154_s23 + $0x44] ss:$8 sps:$4 sm:$0xff]   ;;  %v1879_v43 = vld [vmem:[%s2154_s23 + $0x40] ss:$8 sps:$4 sm:$0xff]   ;;  %v1880_v44 = vld [vmem:[%s2154_s23 + $0x54] ss:$8 sps:$4 sm:$0xff]  }
  0x24   : > { %1567 = vmatpush3.bf16.msra.mxu0 %v1847_v14  ;;  %v1882_v45 = vld [vmem:[%s2154_s23 + $0x50] ss:$8 sps:$4 sm:$0xff]   ;;  %v1883_v46 = vld [vmem:[%s2154_s23 + $0x64] ss:$8 sps:$4 sm:$0xff]   ;;  %v1885_v47 = vld [vmem:[%s2154_s23 + $0x60] ss:$8 sps:$4 sm:$0xff]  }
  0x25   : > { %1631 = vmatpush3.bf16.msra.mxu1 %v1848_v15  ;;  %1568 = vmatprep.subr.bf16.mxu0 %v1849_v16  ;;  %v1886_v48 = vld [vmem:[%s2154_s23 + $0x74] ss:$8 sps:$4 sm:$0xff]   ;;  %v1888_v49 = vld [vmem:[%s2154_s23 + $0x70] ss:$8 sps:$4 sm:$0xff]   ;;  %v933_v50 = vld [vmem:[%s2358_s5 + $0x8] sm:$0xff]  ;;  %s317_s23 = sand.u32 1, %s1941_s12  }
  0x26   : > { %1632 = vmatprep.subr.bf16.mxu1 %v1850_v17  ;;  %v932_v51 = vld [vmem:[%s2358_s5] sm:$0xff]  ;;  %v1156_v52 = vld [vmem:[%s2360_s7 + $0x18] sm:$0xff]  ;;  %v1155_v53 = vld [vmem:[%s2360_s7 + $0x10] sm:$0xff]  ;;  %s1465_s30 = sshll.u32 %s317_s23, 7  ;;  %s2313_s25 = scalar_lea.sflag [#allocation5], %s317_s23 }
  0x27   : > { %v883_v56 = vld [vmem:[%s2201_s22] sm:$0xff]  ;;  %v884_v1 = vld [vmem:[%s2201_s22 + $0x8] sm:$0xff]  ;;  %v885_v11 = vld [vmem:[%s2201_s22 + $0x10] sm:$0xff]  ;;  %s2284_s17 = scalar_lea.vmem [#allocation4], %s1465_s30  ;;  %s1895_s30 = scalar_lea.vmem %s1894_s29, 4096 }
  0x28   : > { %1569 = vmatpush3.bf16.msra.mxu0 %v1851_v18  ;;  %v900_v62 = vmul.f32 %v2204_v57, %v883_v56  ;;  %v901_v8 = vmul.f32 %v2204_v57, %v884_v1  ;;  %v902_v18 = vmul.f32 %v2204_v57, %v885_v11 }
  0x29   : > { %1633 = vmatpush3.bf16.msra.mxu1 %v1852_v19  ;;  %1570 = vmatprep.subr.bf16.mxu0 %v1853_v20 }
  0x2a   : > { %1634 = vmatprep.subr.bf16.mxu1 %v1854_v21  ;;  %v886_v21 = vld [vmem:[%s2201_s22 + $0x18] sm:$0xff] }
  0x2c   : > { %1571 = vmatpush3.bf16.msra.mxu0 %v1855_v22 }
  0x2d   : > { %1635 = vmatpush3.bf16.msra.mxu1 %v1856_v23  ;;  %1572 = vmatprep.subr.bf16.mxu0 %v1857_v24 }
  0x2e   : > { %1636 = vmatprep.subr.bf16.mxu1 %v1858_v25 }
  0x30   : > { %1573 = vmatpush3.bf16.msra.mxu0 %v1859_v26 }
  0x31   : > { %1637 = vmatpush3.bf16.msra.mxu1 %v1860_v27  ;;  %1574 = vmatprep.subr.bf16.mxu0 %v1861_v28  ;;  %v903_v28 = vmul.f32 %v2204_v57, %v886_v21 }
  0x32   : > { %1638 = vmatprep.subr.bf16.mxu1 %v1862_v29 }
  0x34   : > { %1575 = vmatpush3.bf16.msra.mxu0 %v1863_v30 }
  0x35   : > { %1639 = vmatpush3.bf16.msra.mxu1 %v1864_v31  ;;  %1728 = vmatprep.subr.mxu0 %v935_v37  ;;  %v887_v31 = vld [vmem:[%s2201_s22 + $0x20] sm:$0xff] }
  0x36   : > { %1760 = vmatprep.subr.mxu1 %v1156_v52 }
  0x37   : > { %624 = vmatmul.mubr.bf16.vlgmr.msra.gmra.mxu0 %v1865_v32 }
  0x38   : > { %817 = vmatmul.mubr.bf16.vlgmr.msra.gmra.mxu1 %v1865_v32  ;;  %631 = vmatprep.mubr.bf16.mxu0 %v1868_v34 }
  0x39   : > { %824 = vmatprep.mubr.bf16.mxu1 %v1868_v34  ;;  %1729 = vmatpush3.msra.mxu0 %v935_v37 }
  0x3a   : > { %1730 = vmatprep.subr.mxu0 %v934_v38  ;;  %1761 = vmatpush3.msra.mxu1 %v1156_v52 }
  0x3b   : > { %1731 = vmatpush3.msra.mxu0 %v934_v38  ;;  %1762 = vmatprep.subr.mxu1 %v1155_v53  ;;  %v904_v38 = vmul.f32 %v2204_v57, %v887_v31 }
  0x3c   : > { %1732 = vmatprep.subr.mxu0 %v933_v50  ;;  %1763 = vmatpush3.msra.mxu1 %v1155_v53 }
  0x3d   : > { %1733 = vmatpush3.msra.mxu0 %v933_v50 }
  0x3e   : > { %1734 = vmatprep.subr.mxu0 %v932_v51 }
  0x3f   : > { %632 = vmatmul.mubr.bf16.gmra.mxu0 %v1870_v35 }
  0x40   : > { %825 = vmatmul.mubr.bf16.gmra.mxu1 %v1870_v35  ;;  %639 = vmatprep.mubr.bf16.mxu0 %v1871_v36 }
  0x41   : > { %832 = vmatprep.mubr.bf16.mxu1 %v1871_v36  ;;  %1735 = vmatpush3.msra.mxu0 %v932_v51  ;;  %v889_v51 = vld [vmem:[%s2201_s22 + $0x30] sm:$0xff] }
  0x47   : > { %640 = vmatmul.mubr.bf16.gmra.mxu0 %v1873_v39 }
  0x48   : > { %833 = vmatmul.mubr.bf16.gmra.mxu1 %v1873_v39  ;;  %647 = vmatprep.mubr.bf16.mxu0 %v1874_v40 }
  0x49   : > { %840 = vmatprep.mubr.bf16.mxu1 %v1874_v40 }
  0x4f   : > { %648 = vmatmul.mubr.bf16.gmra.mxu0 %v1876_v41 }
  0x50   : > { %841 = vmatmul.mubr.bf16.gmra.mxu1 %v1876_v41  ;;  %655 = vmatprep.mubr.bf16.mxu0 %v1877_v42  ;;  %v888_v41 = vld [vmem:[%s2201_s22 + $0x28] sm:$0xff] }
  0x51   : > { %848 = vmatprep.mubr.bf16.mxu1 %v1877_v42 }
  0x57   : > { %656 = vmatmul.mubr.bf16.gmra.mxu0 %v1879_v43 }
  0x58   : > { %849 = vmatmul.mubr.bf16.gmra.mxu1 %v1879_v43  ;;  %663 = vmatprep.mubr.bf16.mxu0 %v1880_v44 }
  0x59   : > { %856 = vmatprep.mubr.bf16.mxu1 %v1880_v44 }
  0x5f   : > { %664 = vmatmul.mubr.bf16.gmra.mxu0 %v1882_v45 }
  0x60   : > { %857 = vmatmul.mubr.bf16.gmra.mxu1 %v1882_v45  ;;  %671 = vmatprep.mubr.bf16.mxu0 %v1883_v46 }
  0x61   : > { %864 = vmatprep.mubr.bf16.mxu1 %v1883_v46 }
  0x67   : > { %672 = vmatmul.mubr.bf16.gmra.mxu0 %v1885_v47 }
  0x68   : > { %865 = vmatmul.mubr.bf16.gmra.mxu1 %v1885_v47  ;;  %679 = vmatprep.mubr.bf16.mxu0 %v1886_v48 }
  0x69   : > { %872 = vmatprep.mubr.bf16.mxu1 %v1886_v48  ;;  %v905_v48 = vmul.f32 %v2204_v57, %v888_v41 }
  0x6f   : > { %680 = vmatmul.mubr.bf16.gmra.mxu0 %v1888_v49 }
  0x70   : > { %873 = vmatmul.mubr.bf16.gmra.mxu1 %v1888_v49 }
  0xf7   : > { %v1576_v54 = vpop.f32.mrf.mxu0 }
  0xf8   : > { %v1640_v55 = vpop.f32.mrf.mxu1 }
  0xf9   : > { %v1577_v58 = vpop.f32.mrf.mxu0 }
  0xfa   : > { %v1641_v59 = vpop.f32.mrf.mxu1  ;;  %v1578_v60 = vadd.f32 %v1577_v58, %v1576_v54 }
  0xfb   : > { %v1642_v61 = vadd.f32 %v1641_v59, %v1640_v55  ;;  %v1579_v63 = vpop.f32.mrf.mxu0  ;;  %v906_v59 = vmul.f32 %v2204_v57, %v889_v51 }
  0xfc   : > { %v1643_v0 = vpop.f32.mrf.mxu1 }
  0xfd   : > { %v819_v2 = vadd.f32 %v1642_v61, %v1578_v60  ;;  %v1580_v3 = vpop.f32.mrf.mxu0 }
  0xfe   : > { %v1644_v4 = vpop.f32.mrf.mxu1  ;;  %v1581_v6 = vadd.f32 %v1580_v3, %v1579_v63 }
  0xff   : > { %v916_v5 = vadd.f32 %v900_v62, %v819_v2  ;;  %v1645_v7 = vadd.f32 %v1644_v4, %v1643_v0  ;;  %v1582_v9 = vpop.f32.mrf.mxu0  ;;  %v890_v62 = vld [vmem:[%s2201_s22 + $0x38] sm:$0xff] }
 0x100   : > { %v1646_v10 = vpop.f32.mrf.mxu1 }
 0x101   : > { %v822_v12 = vadd.f32 %v1645_v7, %v1581_v6  ;;  %1736 = vmatprep.mubr.msk.f32.mxu0 %vm943_vm0, %v916_v5  ;;  %v1583_v13 = vpop.f32.mrf.mxu0  ;;  %v907_v5 = vmul.f32 %v2204_v57, %v890_v62 }
 0x102   : > { %v1647_v14 = vpop.f32.mrf.mxu1  ;;  %v1584_v16 = vadd.f32 %v1583_v13, %v1582_v9 }
 0x103   : > { %v917_v15 = vadd.f32 %v901_v8, %v822_v12  ;;  %v1648_v17 = vadd.f32 %v1647_v14, %v1646_v10  ;;  %v1585_v19 = vpop.f32.mrf.mxu0  ;;  %v891_v8 = vld [vmem:[%s2201_s22 + $0x40] sm:$0xff] }
 0x104   : > { %v1649_v20 = vpop.f32.mrf.mxu1 }
 0x105   : > { %v827_v22 = vadd.f32 %v1648_v17, %v1584_v16  ;;  %1737 = vmatmul.mubr.msk.f32.vlgmr.msra.gmra.mxu0 %vm943_vm0, %v917_v15  ;;  %v1586_v23 = vpop.f32.mrf.mxu0  ;;  %v908_v15 = vmul.f32 %v2204_v57, %v891_v8 }
 0x106   : > { %v1650_v24 = vpop.f32.mrf.mxu1  ;;  %v1587_v26 = vadd.f32 %v1586_v23, %v1585_v19 }
 0x107   : > { %v918_v25 = vadd.f32 %v902_v18, %v827_v22  ;;  %v1651_v27 = vadd.f32 %v1650_v24, %v1649_v20  ;;  %v1588_v29 = vpop.f32.mrf.mxu0  ;;  %v892_v18 = vld [vmem:[%s2201_s22 + $0x48] sm:$0xff] }
 0x108   : > { %v1652_v30 = vpop.f32.mrf.mxu1 }
 0x109   : > { %v830_v32 = vadd.f32 %v1651_v27, %v1587_v26  ;;  %1739 = vmatprep.mubr.msk.f32.mxu0 %vm943_vm0, %v918_v25  ;;  %v1589_v33 = vpop.f32.mrf.mxu0  ;;  %v909_v25 = vmul.f32 %v2204_v57, %v892_v18 }
 0x10a   : > { %v1653_v34 = vpop.f32.mrf.mxu1  ;;  %v1590_v36 = vadd.f32 %v1589_v33, %v1588_v29 }
 0x10b   : > { %v919_v35 = vadd.f32 %v903_v28, %v830_v32  ;;  %v1654_v37 = vadd.f32 %v1653_v34, %v1652_v30  ;;  %v1591_v39 = vpop.f32.mrf.mxu0  ;;  %v893_v28 = vld [vmem:[%s2201_s22 + $0x50] sm:$0xff] }
 0x10c   : > { %v1655_v40 = vpop.f32.mrf.mxu1 }
 0x10d   : > { %v835_v42 = vadd.f32 %v1654_v37, %v1590_v36  ;;  %1740 = vmatmul.mubr.msk.f32.gmra.mxu0 %vm943_vm0, %v919_v35  ;;  %v1592_v43 = vpop.f32.mrf.mxu0  ;;  %v910_v35 = vmul.f32 %v2204_v57, %v893_v28 }
 0x10e   : > { %v1656_v44 = vpop.f32.mrf.mxu1  ;;  %v1593_v46 = vadd.f32 %v1592_v43, %v1591_v39 }
 0x10f   : > { %v920_v45 = vadd.f32 %v904_v38, %v835_v42  ;;  %v1657_v47 = vadd.f32 %v1656_v44, %v1655_v40  ;;  %v1594_v49 = vpop.f32.mrf.mxu0  ;;  %v894_v38 = vld [vmem:[%s2201_s22 + $0x58] sm:$0xff] }
 0x110   : > { %v1658_v50 = vpop.f32.mrf.mxu1 }
 0x111   : > { %v838_v52 = vadd.f32 %v1657_v47, %v1593_v46  ;;  %1742 = vmatprep.mubr.msk.f32.mxu0 %vm943_vm0, %v920_v45  ;;  %v1595_v53 = vpop.f32.mrf.mxu0  ;;  %v911_v45 = vmul.f32 %v2204_v57, %v894_v38 }
 0x112   : > { %v1659_v54 = vpop.f32.mrf.mxu1  ;;  %v1596_v56 = vadd.f32 %v1595_v53, %v1594_v49 }
 0x113   : > { %v921_v55 = vadd.f32 %v905_v48, %v838_v52  ;;  %v1660_v58 = vadd.f32 %v1659_v54, %v1658_v50  ;;  %v1597_v60 = vpop.f32.mrf.mxu0  ;;  %v895_v48 = vld [vmem:[%s2201_s22 + $0x60] sm:$0xff] }
 0x114   : > { %v1661_v61 = vpop.f32.mrf.mxu1 }
 0x115   : > { %v843_v63 = vadd.f32 %v1660_v58, %v1596_v56  ;;  %1743 = vmatmul.mubr.msk.f32.gmra.mxu0 %vm943_vm0, %v921_v55  ;;  %v1598_v0 = vpop.f32.mrf.mxu0  ;;  %v912_v55 = vmul.f32 %v2204_v57, %v895_v48 }
 0x116   : > { %v1662_v1 = vpop.f32.mrf.mxu1  ;;  %v1599_v3 = vadd.f32 %v1598_v0, %v1597_v60 }
 0x117   : > { %v922_v2 = vadd.f32 %v906_v59, %v843_v63  ;;  %v1663_v4 = vadd.f32 %v1662_v1, %v1661_v61  ;;  %v1600_v6 = vpop.f32.mrf.mxu0  ;;  %v896_v59 = vld [vmem:[%s2201_s22 + $0x68] sm:$0xff] }
 0x118   : > { %v1664_v7 = vpop.f32.mrf.mxu1 }
 0x119   : > { %v846_v9 = vadd.f32 %v1663_v4, %v1599_v3  ;;  %1745 = vmatprep.mubr.msk.f32.mxu0 %vm943_vm0, %v922_v2  ;;  %v1601_v10 = vpop.f32.mrf.mxu0  ;;  %v913_v2 = vmul.f32 %v2204_v57, %v896_v59 }
 0x11a   : > { %v1665_v11 = vpop.f32.mrf.mxu1  ;;  %v1602_v13 = vadd.f32 %v1601_v10, %v1600_v6 }
 0x11b   : > { %v923_v12 = vadd.f32 %v907_v5, %v846_v9  ;;  %v1666_v14 = vadd.f32 %v1665_v11, %v1664_v7  ;;  %v1603_v16 = vpop.f32.mrf.mxu0  ;;  %v897_v5 = vld [vmem:[%s2201_s22 + $0x70] sm:$0xff] }
 0x11c   : > { %v1667_v17 = vpop.f32.mrf.mxu1 }
 0x11d   : > { %v851_v19 = vadd.f32 %v1666_v14, %v1602_v13  ;;  %1746 = vmatmul.mubr.msk.f32.gmra.mxu0 %vm943_vm0, %v923_v12  ;;  %v1604_v20 = vpop.f32.mrf.mxu0  ;;  %v914_v12 = vmul.f32 %v2204_v57, %v897_v5 }
 0x11e   : > { %v1668_v21 = vpop.f32.mrf.mxu1  ;;  %v1605_v23 = vadd.f32 %v1604_v20, %v1603_v16 }
 0x11f   : > { %v924_v22 = vadd.f32 %v908_v15, %v851_v19  ;;  %v1669_v24 = vadd.f32 %v1668_v21, %v1667_v17  ;;  %v1606_v26 = vpop.f32.mrf.mxu0  ;;  %v898_v15 = vld [vmem:[%s2201_s22 + $0x78] sm:$0xff]  ;;  %s1387_s22 = sshll.u32 %s2284_s17, 4  ;;  %s2307_s22 = int_to_ptr.vmem [resolvable:$true] %s1387_s22 }
 0x120   : > { %v1670_v27 = vpop.f32.mrf.mxu1  ;;  %s1889_s0 = scalar_lea.vmem %s2307_s22, 2048  ;;  %p1896_p0 = scmp.lt.s32.totalorder %s2307_s22, %s1894_s29 }
 0x121   : > { %v854_v29 = vadd.f32 %v1669_v24, %v1605_v23  ;;  %1748 = vmatprep.mubr.msk.f32.mxu0 %vm943_vm0, %v924_v22  ;;  %v1607_v30 = vpop.f32.mrf.mxu0  ;;  %v915_v22 = vmul.f32 %v2204_v57, %v898_v15  ;;  %v1519_v57 = vld [vmem:[%s2359_s6] ss:$0 sm:$0xff]  ;;  %p1890_p11 = scmp.ne.s32.totalorder %s2307_s22, %s1889_s0  ;;  %p1897_p1 = scmp.lt.s32.totalorder %s1895_s30, %s1889_s0 }
 0x122   : > { %v1671_v31 = vpop.f32.mrf.mxu1  ;;  %v1608_v33 = vadd.f32 %v1607_v30, %v1606_v26  ;;  %v1153_v26 = vld [vmem:[%s2360_s7] sm:$0xff] }
 0x123   : > { %v925_v32 = vadd.f32 %v909_v25, %v854_v29  ;;  %v1672_v34 = vadd.f32 %v1671_v31, %v1670_v27  ;;  %v1609_v36 = vpop.f32.mrf.mxu0  ;;  %v1154_v25 = vld [vmem:[%s2360_s7 + $0x8] sm:$0xff]  ;;  %p1891_p12 = pnand %p1890_p11, %p2045_p5  ;;  %p1898_p2 = por %p1897_p1, %p1896_p0 }
 0x124   : > { %v1673_v37 = vpop.f32.mrf.mxu1  ;;  %1764 = vmatprep.subr.mxu1 %v1154_v25 }
 0x125   : > { %v859_v39 = vadd.f32 %v1672_v34, %v1608_v33  ;;  %1749 = vmatmul.mubr.msk.f32.gmra.mxu0 %vm943_vm0, %v925_v32  ;;  %v1610_v40 = vpop.f32.mrf.mxu0  ;;  %1765 = vmatpush3.msra.mxu1 %v1154_v25  ;;  %p1892_p13 = pneg %p1891_p12 }
 0x126   : > { %v1674_v41 = vpop.f32.mrf.mxu1  ;;  %v1611_v43 = vadd.f32 %v1610_v40, %v1609_v36  ;;  %1766 = vmatprep.subr.mxu1 %v1153_v26 }
 0x127   : > { %v926_v42 = vadd.f32 %v910_v35, %v859_v39  ;;  %v1675_v44 = vadd.f32 %v1674_v41, %v1673_v37  ;;  %v1612_v46 = vpop.f32.mrf.mxu0  ;;  %1767 = vmatpush3.msra.mxu1 %v1153_v26  ;;  %p1899_p3 = pnand %p1898_p2, %p1892_p13 }
 0x128   : > { %v1676_v47 = vpop.f32.mrf.mxu1 }
 0x129   : > { %v862_v49 = vadd.f32 %v1675_v44, %v1611_v43  ;;  %1751 = vmatprep.mubr.msk.f32.mxu0 %vm943_vm0, %v926_v42  ;;  %v1613_v50 = vpop.f32.mrf.mxu0 }
 0x12a   : > { %v1677_v51 = vpop.f32.mrf.mxu1  ;;  %v1614_v53 = vadd.f32 %v1613_v50, %v1612_v46 }
 0x12b   : > { %v927_v52 = vadd.f32 %v911_v45, %v862_v49  ;;  %v1678_v54 = vadd.f32 %v1677_v51, %v1676_v47  ;;  %v1615_v56 = vpop.f32.mrf.mxu0 }
 0x12c   : > { %v1679_v58 = vpop.f32.mrf.mxu1 }
 0x12d   : > { %v867_v60 = vadd.f32 %v1678_v54, %v1614_v53  ;;  %1752 = vmatmul.mubr.msk.f32.gmra.mxu0 %vm943_vm0, %v927_v52  ;;  %v1616_v61 = vpop.f32.mrf.mxu0 }
 0x12e   : > { %v1680_v62 = vpop.f32.mrf.mxu1  ;;  %v1617_v0 = vadd.f32 %v1616_v61, %v1615_v56 }
 0x12f   : > { %v928_v63 = vadd.f32 %v912_v55, %v867_v60  ;;  %v1681_v1 = vadd.f32 %v1680_v62, %v1679_v58  ;;  %v1618_v3 = vpop.f32.mrf.mxu0 }
 0x130   : > { %v1682_v4 = vpop.f32.mrf.mxu1 }
 0x131   : > { %v870_v6 = vadd.f32 %v1681_v1, %v1617_v0  ;;  %1754 = vmatprep.mubr.msk.f32.mxu0 %vm943_vm0, %v928_v63  ;;  %v1619_v7 = vpop.f32.mrf.mxu0 }
 0x132   : > { %v1683_v8 = vpop.f32.mrf.mxu1  ;;  %v1620_v10 = vadd.f32 %v1619_v7, %v1618_v3 }
 0x133   : > { %v929_v9 = vadd.f32 %v913_v2, %v870_v6  ;;  %v1684_v11 = vadd.f32 %v1683_v8, %v1682_v4  ;;  %v1621_v13 = vpop.f32.mrf.mxu0 }
 0x134   : > { %v1685_v14 = vpop.f32.mrf.mxu1 }
 0x135   : > { %v875_v16 = vadd.f32 %v1684_v11, %v1620_v10  ;;  %1755 = vmatmul.mubr.msk.f32.gmra.mxu0 %vm943_vm0, %v929_v9  ;;  %v1622_v17 = vpop.f32.mrf.mxu0 }
 0x136   : > { %v1686_v18 = vpop.f32.mrf.mxu1  ;;  %v1623_v20 = vadd.f32 %v1622_v17, %v1621_v13 }
 0x137   : > { %v930_v19 = vadd.f32 %v914_v12, %v875_v16  ;;  %v1687_v21 = vadd.f32 %v1686_v18, %v1685_v14  ;;  %v1536_v12 = vld [vmem:[%s2361_s8] ss:$0 sm:$0xff] }
 0x139   : > { %v878_v23 = vadd.f32 %v1687_v21, %v1623_v20  ;;  %1757 = vmatprep.mubr.msk.f32.mxu0 %vm943_vm0, %v930_v19 }
 0x13b   : > { %v931_v24 = vadd.f32 %v915_v22, %v878_v23 }
 0x13d   : > { %1758 = vmatmul.mubr.msk.f32.gmra.mxu0 %vm943_vm0, %v931_v24 }
 0x1c5   : > { %v1738_v27 = vpop.f32.mrf.mxu0 }
 0x1c6   : > { %v1064_v28 = vadd.f32 %v1738_v27, %v1519_v57 }
 0x1c7   : > { %v1058_v29 = vpop.f32.mrf.mxu0 }
 0x1c8   : > { %v1059_v30 = vadd.f32 %v1519_v57, %v1058_v29  ;;  %v1138_v32 = vmax.f32 %v1064_v28, 0.0 }
 0x1ca   : > { %v1137_v31 = vmax.f32 %v1059_v30, 0.0 }
 0x1cc   : > { %1768 = vmatprep.mubr.msk.f32.mxu1 %vm943_vm0, %v1137_v31 }
 0x1cd   : > { %v1741_v33 = vpop.f32.mrf.mxu0  ;;  %1769 = vmatmul.mubr.msk.f32.vlgmr.msra.gmra.mxu1 %vm943_vm0, %v1138_v32 }
 0x1ce   : > { %v1074_v34 = vadd.f32 %v1741_v33, %v1519_v57 }
 0x1cf   : > { %v1068_v35 = vpop.f32.mrf.mxu0 }
 0x1d0   : > { %v1069_v36 = vadd.f32 %v1519_v57, %v1068_v35  ;;  %v1140_v38 = vmax.f32 %v1074_v34, 0.0 }
 0x1d2   : > { %v1139_v37 = vmax.f32 %v1069_v36, 0.0 }
 0x1d4   : > { %1771 = vmatprep.mubr.msk.f32.mxu1 %vm943_vm0, %v1139_v37 }
 0x1d5   : > { %v1744_v39 = vpop.f32.mrf.mxu0  ;;  %1772 = vmatmul.mubr.msk.f32.gmra.mxu1 %vm943_vm0, %v1140_v38 }
 0x1d6   : > { %v1084_v40 = vadd.f32 %v1744_v39, %v1519_v57 }
 0x1d7   : > { %v1078_v41 = vpop.f32.mrf.mxu0 }
 0x1d8   : > { %v1079_v42 = vadd.f32 %v1519_v57, %v1078_v41  ;;  %v1142_v44 = vmax.f32 %v1084_v40, 0.0 }
 0x1da   : > { %v1141_v43 = vmax.f32 %v1079_v42, 0.0 }
 0x1dc   : > { %1774 = vmatprep.mubr.msk.f32.mxu1 %vm943_vm0, %v1141_v43 }
 0x1dd   : > { %v1747_v45 = vpop.f32.mrf.mxu0  ;;  %1775 = vmatmul.mubr.msk.f32.gmra.mxu1 %vm943_vm0, %v1142_v44 }
 0x1de   : > { %v1094_v46 = vadd.f32 %v1747_v45, %v1519_v57 }
 0x1df   : > { %v1088_v47 = vpop.f32.mrf.mxu0 }
 0x1e0   : > { %v1089_v48 = vadd.f32 %v1519_v57, %v1088_v47  ;;  %v1144_v50 = vmax.f32 %v1094_v46, 0.0 }
 0x1e2   : > { %v1143_v49 = vmax.f32 %v1089_v48, 0.0 }
 0x1e4   : > { %1777 = vmatprep.mubr.msk.f32.mxu1 %vm943_vm0, %v1143_v49 }
 0x1e5   : > { %v1750_v51 = vpop.f32.mrf.mxu0  ;;  %1778 = vmatmul.mubr.msk.f32.gmra.mxu1 %vm943_vm0, %v1144_v50 }
 0x1e6   : > { %v1104_v52 = vadd.f32 %v1750_v51, %v1519_v57 }
 0x1e7   : > { %v1098_v53 = vpop.f32.mrf.mxu0 }
 0x1e8   : > { %v1099_v54 = vadd.f32 %v1519_v57, %v1098_v53  ;;  %v1146_v56 = vmax.f32 %v1104_v52, 0.0 }
 0x1ea   : > { %v1145_v55 = vmax.f32 %v1099_v54, 0.0 }
 0x1ec   : > { %1780 = vmatprep.mubr.msk.f32.mxu1 %vm943_vm0, %v1145_v55 }
 0x1ed   : > { %v1753_v58 = vpop.f32.mrf.mxu0  ;;  %1781 = vmatmul.mubr.msk.f32.gmra.mxu1 %vm943_vm0, %v1146_v56 }
 0x1ee   : > { %v1114_v59 = vadd.f32 %v1753_v58, %v1519_v57 }
 0x1ef   : > { %v1108_v60 = vpop.f32.mrf.mxu0 }
 0x1f0   : > { %v1109_v61 = vadd.f32 %v1519_v57, %v1108_v60  ;;  %v1148_v63 = vmax.f32 %v1114_v59, 0.0 }
 0x1f2   : > { %v1147_v62 = vmax.f32 %v1109_v61, 0.0 }
 0x1f4   : > { %1783 = vmatprep.mubr.msk.f32.mxu1 %vm943_vm0, %v1147_v62 }
 0x1f5   : > { %v1756_v0 = vpop.f32.mrf.mxu0  ;;  %1784 = vmatmul.mubr.msk.f32.gmra.mxu1 %vm943_vm0, %v1148_v63 }
 0x1f6   : > { %v1124_v1 = vadd.f32 %v1756_v0, %v1519_v57 }
 0x1f7   : > { %v1118_v2 = vpop.f32.mrf.mxu0 }
 0x1f8   : > { %v1119_v3 = vadd.f32 %v1519_v57, %v1118_v2  ;;  %v1150_v5 = vmax.f32 %v1124_v1, 0.0 }
 0x1fa   : > { %v1149_v4 = vmax.f32 %v1119_v3, 0.0 }
 0x1fc   : > { %1786 = vmatprep.mubr.msk.f32.mxu1 %vm943_vm0, %v1149_v4 }
 0x1fd   : > { %v1759_v6 = vpop.f32.mrf.mxu0  ;;  %1787 = vmatmul.mubr.msk.f32.gmra.mxu1 %vm943_vm0, %v1150_v5 }
 0x1fe   : > { %v1134_v7 = vadd.f32 %v1759_v6, %v1519_v57 }
 0x1ff   : > { %v1128_v8 = vpop.f32.mrf.mxu0 }
 0x200   : > { %v1129_v9 = vadd.f32 %v1519_v57, %v1128_v8  ;;  %v1152_v11 = vmax.f32 %v1134_v7, 0.0 }
 0x202   : > { %v1151_v10 = vmax.f32 %v1129_v9, 0.0 }
 0x204   : > { %1789 = vmatprep.mubr.msk.f32.mxu1 %vm943_vm0, %v1151_v10 }
 0x205   : > { %1790 = vmatmul.mubr.msk.f32.gmra.mxu1 %vm943_vm0, %v1152_v11 }
 0x28d   : > { %v1770_v13 = vpop.f32.mrf.mxu1 }
 0x28e   : > { %v1284_v14 = vadd.f32 %v1770_v13, %v1536_v12 }
 0x28f   : > { %v1278_v15 = vpop.f32.mrf.mxu1 }
 0x290   : > { %1358 = vst [vmem:[%s2284_s17 + $0x8] sm:$0xff] %v1284_v14  ;;  %v1279_v16 = vadd.f32 %v1536_v12, %v1278_v15 }
 0x292   : > { %1357 = vst [vmem:[%s2284_s17] sm:$0xff] %v1279_v16 }
 0x295   : > { %v1773_v17 = vpop.f32.mrf.mxu1 }
 0x296   : > { %v1294_v18 = vadd.f32 %v1773_v17, %v1536_v12 }
 0x297   : > { %v1288_v19 = vpop.f32.mrf.mxu1 }
 0x298   : > { %1360 = vst [vmem:[%s2284_s17 + $0x18] sm:$0xff] %v1294_v18  ;;  %v1289_v20 = vadd.f32 %v1536_v12, %v1288_v19 }
 0x29a   : > { %1359 = vst [vmem:[%s2284_s17 + $0x10] sm:$0xff] %v1289_v20 }
 0x29d   : > { %v1776_v21 = vpop.f32.mrf.mxu1 }
 0x29e   : > { %v1304_v22 = vadd.f32 %v1776_v21, %v1536_v12 }
 0x29f   : > { %v1298_v23 = vpop.f32.mrf.mxu1 }
 0x2a0   : > { %1362 = vst [vmem:[%s2284_s17 + $0x28] sm:$0xff] %v1304_v22  ;;  %v1299_v24 = vadd.f32 %v1536_v12, %v1298_v23 }
 0x2a2   : > { %1361 = vst [vmem:[%s2284_s17 + $0x20] sm:$0xff] %v1299_v24 }
 0x2a5   : > { %v1779_v25 = vpop.f32.mrf.mxu1 }
 0x2a6   : > { %v1314_v26 = vadd.f32 %v1779_v25, %v1536_v12 }
 0x2a7   : > { %v1308_v57 = vpop.f32.mrf.mxu1 }
 0x2a8   : > { %1364 = vst [vmem:[%s2284_s17 + $0x38] sm:$0xff] %v1314_v26  ;;  %v1309_v27 = vadd.f32 %v1536_v12, %v1308_v57 }
 0x2aa   : > { %1363 = vst [vmem:[%s2284_s17 + $0x30] sm:$0xff] %v1309_v27 }
 0x2ad   : > { %v1782_v28 = vpop.f32.mrf.mxu1 }
 0x2ae   : > { %v1324_v29 = vadd.f32 %v1782_v28, %v1536_v12 }
 0x2af   : > { %v1318_v30 = vpop.f32.mrf.mxu1 }
 0x2b0   : > { %1366 = vst [vmem:[%s2284_s17 + $0x48] sm:$0xff] %v1324_v29  ;;  %v1319_v31 = vadd.f32 %v1536_v12, %v1318_v30 }
 0x2b2   : > { %1365 = vst [vmem:[%s2284_s17 + $0x40] sm:$0xff] %v1319_v31 }
 0x2b5   : > { %v1785_v32 = vpop.f32.mrf.mxu1 }
 0x2b6   : > { %v1334_v33 = vadd.f32 %v1785_v32, %v1536_v12 }
 0x2b7   : > { %v1328_v34 = vpop.f32.mrf.mxu1 }
 0x2b8   : > { %1368 = vst [vmem:[%s2284_s17 + $0x58] sm:$0xff] %v1334_v33  ;;  %v1329_v35 = vadd.f32 %v1536_v12, %v1328_v34 }
 0x2ba   : > { %1367 = vst [vmem:[%s2284_s17 + $0x50] sm:$0xff] %v1329_v35 }
 0x2bd   : > { %v1788_v36 = vpop.f32.mrf.mxu1 }
 0x2be   : > { %v1344_v37 = vadd.f32 %v1788_v36, %v1536_v12 }
 0x2bf   : > { %v1338_v38 = vpop.f32.mrf.mxu1 }
 0x2c0   : > { %1370 = vst [vmem:[%s2284_s17 + $0x68] sm:$0xff] %v1344_v37  ;;  %v1339_v39 = vadd.f32 %v1536_v12, %v1338_v38 }
 0x2c2   : > { %1369 = vst [vmem:[%s2284_s17 + $0x60] sm:$0xff] %v1339_v39 }
 0x2c5   : > { %v1791_v40 = vpop.f32.mrf.mxu1 }
 0x2c6   : > { %v1354_v41 = vadd.f32 %v1791_v40, %v1536_v12 }
 0x2c7   : > { %v1348_v42 = vpop.f32.mrf.mxu1 }
 0x2c8   : > { %1372 = vst [vmem:[%s2284_s17 + $0x78] sm:$0xff] %v1354_v41  ;;  %v1349_v43 = vadd.f32 %v1536_v12, %v1348_v42 }
 0x2ca   : > { %1371 = vst [vmem:[%s2284_s17 + $0x70] sm:$0xff] %v1349_v43 }
 0x2cb   : > { %1902 = shalt.err (!%p1899_p3)
}
 0x2cc   : > { %s1903_s23 = scalar_lea.hbm %s2305_s24, 2048  ;;  %s1907_s17 = scalar_lea.hbm %s2362_s9, 4096 }
 0x2cd   : > { %p1904_p4 = scmp.ne.s32.totalorder %s2305_s24, %s1903_s23  ;;  %p1908_p9 = scmp.lt.s32.totalorder %s2305_s24, %s2362_s9 }
 0x2ce   : > { %p1909_p10 = scmp.lt.s32.totalorder %s1907_s17, %s1903_s23 }
 0x2cf   : > { %p1905_p7 = pnand %p1904_p4, %p2045_p5 }
 0x2d0   : > { %p1910_p11 = por %p1909_p10, %p1908_p9 }
 0x2d1   : > { %p1906_p8 = pneg %p1905_p7 }
 0x2d3   : > { %p1911_p12 = pnand %p1910_p11, %p1906_p8 }
 0x2d5   : > { %1914 = shalt.err (!%p1911_p12)
}
 0x2d6   : > { %s1952_s26 = smov 128   ;;  %s1953_s0 = smov 8  }
 0x2d7   : > { %1792 = dma.vmem_to_hbm [thread:$0]  (%p2045_p5), %s2307_s22, 2048, %s2305_s24, %s2313_s25, %s1952_s26, %s1952_s26, %s1953_s0  }
 0x2d8 PF: > { %p1798_p13 = scmp.ge.s32.totalorder %s1949_s14, 2  ;;  %s1402_s27 = sand.u32 1, %s1937_s11  }
 0x2d9   : > { %s1403_s29 = scalar_lea.sflag [#allocation5], %s1402_s27 }
 0x2da   : > { %p1795_p0 = pnand %p1798_p13, %p2049_p6 }
 0x2dc   : > { %p1796_p1 = pneg %p1795_p0 }
 0x2de   : > { %1932 = dma.done.wait (%p1796_p1), %s1403_s29, 2048  }
 0x2df   : > { %1934 = vsyncadd (%p1796_p1), %s1403_s29, 4294965248  ;;  %p20_p2 = scmp.ge.s32.totalorder %s2032_s16, 4   ;;  %s2365_s11 = smov %s1941_s12 }
 0x2e0   : > { %s2366_s12 = smov %s1945_s13  ;;  %s2367_s13 = smov %s2043_s19 }
 0x2e1   : > { %s2368_s14 = smov %s2032_s16  ;;  %22 = sbr.rel (!%p20_p2) target bundleno = 5 (0x5), region = 90 }
 0x2e6   :  { %1408 = vsyncpa [#allocation5], 1 }
 0x2e7   :  { %1410 = vsyncpa [#allocation5 + $0x1], 1 }

// kernel: tpu_custom_call.1
= control target key start
LH: loop header
LB: loop body
LE: loop exit
PB: predicated region body
PF: predicated region fallthrough
CT: control target
= control target key end

     0   :  { %s2353_s0 = inlined_call_operand.<no memory space> [shape: f32[1], index: 0, kind: input, shape index: {}]   ;;  %s2354_s1 = inlined_call_operand.vmem [shape: bf16[256,256], index: 1, kind: input, shape index: {}]   ;;  %s2355_s2 = inlined_call_operand.vmem [shape: bf16[256,32], index: 2, kind: input, shape index: {}]   ;;  %s2356_s3 = inlined_call_operand.vmem [shape: bf16[256,32], index: 3, kind: input, shape index: {}]   ;;  %s2357_s4 = inlined_call_operand.vmem [shape: f32[256,32], index: 4, kind: input, shape index: {}]   ;;  %s2358_s5 = inlined_call_operand.vmem [shape: f32[32,32], index: 5, kind: input, shape index: {}]   ;;  %s2359_s6 = inlined_call_operand.vmem [shape: f32[1,32], index: 6, kind: input, shape index: {}]   ;;  %s2360_s7 = inlined_call_operand.vmem [shape: f32[32,128], index: 7, kind: input, shape index: {}]   ;;  %s2361_s8 = inlined_call_operand.vmem [shape: f32[1,128], index: 8, kind: input, shape index: {}]   ;;  %s2362_s9 = inlined_call_operand.hbm [shape: f32[256,128], index: 9, kind: output, shape index: {}]  }
   0x1   :  { %14 = sst [smem:[#allocation3]] %s2353_s0 }
   0x2   :  { %15 = vsyncpa [#allocation5], 0 }
   0x3   :  { %17 = vsyncpa [#allocation5 + $0x1], 0  ;;  %s2007_s11 = smov 0   ;;  %s2009_s12 = smov 0  }
   0x4   :  { %s2011_s13 = smov 0   ;;  %s2013_s14 = smov 0  }
   0x5 LB: > { %s2028_s0 = sadd.s32 4294967295, %s1949_s14   ;;  %s1461_s15 = sadd.s32 4294967294, %s1949_s14   ;;  %s1949_s14 = sphi %s2013_s14, %s2368_s14   ;;  %s1945_s13 = sphi %s2011_s13, %s2367_s13   ;;  %s1941_s12 = sphi %s2009_s12, %s2366_s12   ;;  %s1937_s11 = sphi %s2007_s11, %s2365_s11  }
   0x6   : > { %s2032_s16 = sadd.s32 1, %s1949_s14   ;;  %s208_s17 = sadd.s32 1, %s1945_s13 }
   0x7   : > { %s205_s18 = ssub.s32 %s1949_s14, %s2032_s16  ;;  %p218_p0 = scmp.ne.s32.totalorder %s1945_s13, %s1941_s12 }
   0x8   : > { %p206_p1 = scmp.eq.s32.totalorder %s205_s18, 0  ;;  %p219_p2 = scmp.eq.s32.totalorder %s2028_s0, 1 }
   0x9   : > { %p224_p3 = scmp.ne.s32.totalorder %s1941_s12, %s1937_s11  ;;  %p225_p4 = scmp.eq.s32.totalorder %s1461_s15, 1 }
   0xa   : > { %s2043_s19 = scalar_select %p206_p1, %s1945_s13, %s208_s17  }
   0xb   : > { %p2045_p5 = por %p219_p2, %p218_p0  ;;  %p2049_p6 = por %p225_p4, %p224_p3 }
   0xc   : > { %p1464_p7 = scmp.ge.s32.totalorder %s1949_s14, 1  ;;  %p280_p8 = scmp.lt.s32.totalorder %s1949_s14, 3 }
   0xe   : > { %p281_p9 = pnand %p1464_p7, %p280_p8 }
   0xf   : > { %s1466_s28 = sshll.u32 (!%p281_p9), %s2028_s0, 4  ;;  %s881_s10 = sld [smem:[#allocation3]] (!%p281_p9) }
  0x10   : > { %284 = sbr.rel (%p281_p9) target bundleno = 728 (0x2d8), region = 52  ;;  %p321_p10 = scmp.lt.s32.totalorder (!%p281_p9), %s1466_s28, 31 }
  0x11   : > { %s1559_s18 = sshll.u32 (!%p281_p9), %s2028_s0, 11  ;;  %s1951_s27 = smov (!%p281_p9), [#allocation4]  }
  0x12   : > { %s2305_s24 = scalar_lea.hbm (!%p281_p9), %s2362_s9, %s1559_s18  ;;  %s1893_s29 = sshll.u32 (!%p281_p9), %s1951_s27, 4  ;;  %s1894_s29 = int_to_ptr.vmem [resolvable:$false] %s1893_s29 }
  0x15   : > { %v1833_v0 = vld [vmem:[%s2356_s3 + $0x78] sm:$0xff]   ;;  %v1837_v4 = vld [vmem:[%s2356_s3 + $0x70] sm:$0xff]   ;;  %v1841_v8 = vld [vmem:[%s2356_s3 + $0x68] sm:$0xff]   ;;  %s2370_s28 = smov (!%p321_p10, %s1466_s28), 31  ;;  %s882_s15 = sadd.f32 1.0, %s881_s10  ;;  %vm943_vm0 = vcmask 261120  }
  0x16   : > { %v1834_v1 = vld [vmem:[%s2355_s2 + $0x78] sm:$0xff]   ;;  %1560 = vmatprep.subr.bf16.mxu0 %v1833_v0  ;;  %v1838_v5 = vld [vmem:[%s2355_s2 + $0x70] sm:$0xff]   ;;  %v1842_v9 = vld [vmem:[%s2355_s2 + $0x68] sm:$0xff]   ;;  %s1558_s26 = sshll.u32 %s2370_s28, 3 }
  0x17   : > { %v1835_v2 = vld [vmem:[%s2356_s3 + $0x38] sm:$0xff]   ;;  %1624 = vmatprep.subr.bf16.mxu1 %v1834_v1  ;;  %v1839_v6 = vld [vmem:[%s2356_s3 + $0x30] sm:$0xff]   ;;  %v1843_v10 = vld [vmem:[%s2356_s3 + $0x28] sm:$0xff]   ;;  %s2154_s23 = scalar_lea.vmem %s2354_s1, %s1558_s26  ;;  %s2201_s22 = scalar_lea.vmem %s2357_s4, %s1558_s26  ;;  %v2204_v57 = vstv %s882_s15 }
  0x18   : > { %v1836_v3 = vld [vmem:[%s2355_s2 + $0x38] sm:$0xff]   ;;  %1561 = vmatpush3.bf16.msra.mxu0 %v1835_v2  ;;  %v1840_v7 = vld [vmem:[%s2355_s2 + $0x30] sm:$0xff]   ;;  %v1844_v11 = vld [vmem:[%s2355_s2 + $0x28] sm:$0xff]  }
  0x19   : > { %1625 = vmatpush3.bf16.msra.mxu1 %v1836_v3  ;;  %1562 = vmatprep.subr.bf16.mxu0 %v1837_v4  ;;  %v1845_v12 = vld [vmem:[%s2356_s3 + $0x60] sm:$0xff]   ;;  %v1849_v16 = vld [vmem:[%s2356_s3 + $0x58] sm:$0xff]   ;;  %v1853_v20 = vld [vmem:[%s2356_s3 + $0x50] sm:$0xff]  }
  0x1a   : > { %1626 = vmatprep.subr.bf16.mxu1 %v1838_v5  ;;  %v1846_v13 = vld [vmem:[%s2355_s2 + $0x60] sm:$0xff]   ;;  %v1850_v17 = vld [vmem:[%s2355_s2 + $0x58] sm:$0xff]   ;;  %v1854_v21 = vld [vmem:[%s2355_s2 + $0x50] sm:$0xff]  }
  0x1b   : > { %v1847_v14 = vld [vmem:[%s2356_s3 + $0x20] sm:$0xff]   ;;  %v1851_v18 = vld [vmem:[%s2356_s3 + $0x18] sm:$0xff]   ;;  %v1855_v22 = vld [vmem:[%s2356_s3 + $0x10] sm:$0xff]  }
  0x1c   : > { %1563 = vmatpush3.bf16.msra.mxu0 %v1839_v6  ;;  %v1848_v15 = vld [vmem:[%s2355_s2 + $0x20] sm:$0xff]   ;;  %v1852_v19 = vld [vmem:[%s2355_s2 + $0x18] sm:$0xff]   ;;  %v1856_v23 = vld [vmem:[%s2355_s2 + $0x10] sm:$0xff]  }
  0x1d   : > { %1627 = vmatpush3.bf16.msra.mxu1 %v1840_v7  ;;  %1564 = vmatprep.subr.bf16.mxu0 %v1841_v8  ;;  %v1857_v24 = vld [vmem:[%s2356_s3 + $0x48] sm:$0xff]   ;;  %v1861_v28 = vld [vmem:[%s2356_s3 + $0x40] sm:$0xff]   ;;  %v1868_v34 = vld [vmem:[%s2154_s23 + $0x14] ss:$8 sps:$4 sm:$0xff]  }
  0x1e   : > { %1628 = vmatprep.subr.bf16.mxu1 %v1842_v9  ;;  %v1858_v25 = vld [vmem:[%s2355_s2 + $0x48] sm:$0xff]   ;;  %v1862_v29 = vld [vmem:[%s2355_s2 + $0x40] sm:$0xff]   ;;  %v1870_v35 = vld [vmem:[%s2154_s23 + $0x10] ss:$8 sps:$4 sm:$0xff]  }
  0x1f   : > { %v1859_v26 = vld [vmem:[%s2356_s3 + $0x8] sm:$0xff]   ;;  %v1863_v30 = vld [vmem:[%s2356_s3] sm:$0xff]   ;;  %v935_v37 = vld [vmem:[%s2358_s5 + $0x18] sm:$0xff] }
  0x20   : > { %1565 = vmatpush3.bf16.msra.mxu0 %v1843_v10  ;;  %v1860_v27 = vld [vmem:[%s2355_s2 + $0x8] sm:$0xff]   ;;  %v1864_v31 = vld [vmem:[%s2355_s2] sm:$0xff]   ;;  %v934_v38 = vld [vmem:[%s2358_s5 + $0x10] sm:$0xff] }
  0x21   : > { %1629 = vmatpush3.bf16.msra.mxu1 %v1844_v11  ;;  %1566 = vmatprep.subr.bf16.mxu0 %v1845_v12  ;;  %v1865_v32 = vld [vmem:[%s2154_s23] ss:$8 sps:$4 sm:$0xff]   ;;  %v1867_v33 = vld [vmem:[%s2154_s23 + $0x4] ss:$8 sps:$4 sm:$0xff]   ;;  %v1874_v40 = vld [vmem:[%s2154_s23 + $0x34] ss:$8 sps:$4 sm:$0xff]  }
  0x22   : > { %1630 = vmatprep.subr.bf16.mxu1 %v1846_v13  ;;  %623 = vmatprep.mubr.bf16.mxu0 %v1867_v33  ;;  %v1871_v36 = vld [vmem:[%s2154_s23 + $0x24] ss:$8 sps:$4 sm:$0xff]   ;;  %v1873_v39 = vld [vmem:[%s2154_s23 + $0x20] ss:$8 sps:$4 sm:$0xff]   ;;  %v1876_v41 = vld [vmem:[%s2154_s23 + $0x30] ss:$8 sps:$4 sm:$0xff]  }
  0x23   : > { %816 = vmatprep.mubr.bf16.mxu1 %v1867_v33  ;;  %v1877_v42 = vld [vmem:[%s2154_s23 + $0x44] ss:$8 sps:$4 sm:$0xff]   ;;  %v1879_v43 = vld [vmem:[%s2154_s23 + $0x40] ss:$8 sps:$4 sm:$0xff]   ;;  %v1880_v44 = vld [vmem:[%s2154_s23 + $0x54] ss:$8 sps:$4 sm:$0xff]  }
  0x24   : > { %1567 = vmatpush3.bf16.msra.mxu0 %v1847_v14  ;;  %v1882_v45 = vld [vmem:[%s2154_s23 + $0x50] ss:$8 sps:$4 sm:$0xff]   ;;  %v1883_v46 = vld [vmem:[%s2154_s23 + $0x64] ss:$8 sps:$4 sm:$0xff]   ;;  %v1885_v47 = vld [vmem:[%s2154_s23 + $0x60] ss:$8 sps:$4 sm:$0xff]  }
  0x25   : > { %1631 = vmatpush3.bf16.msra.mxu1 %v1848_v15  ;;  %1568 = vmatprep.subr.bf16.mxu0 %v1849_v16  ;;  %v1886_v48 = vld [vmem:[%s2154_s23 + $0x74] ss:$8 sps:$4 sm:$0xff]   ;;  %v1888_v49 = vld [vmem:[%s2154_s23 + $0x70] ss:$8 sps:$4 sm:$0xff]   ;;  %v933_v50 = vld [vmem:[%s2358_s5 + $0x8] sm:$0xff]  ;;  %s317_s23 = sand.u32 1, %s1941_s12  }
  0x26   : > { %1632 = vmatprep.subr.bf16.mxu1 %v1850_v17  ;;  %v932_v51 = vld [vmem:[%s2358_s5] sm:$0xff]  ;;  %v1156_v52 = vld [vmem:[%s2360_s7 + $0x18] sm:$0xff]  ;;  %v1155_v53 = vld [vmem:[%s2360_s7 + $0x10] sm:$0xff]  ;;  %s1465_s30 = sshll.u32 %s317_s23, 7  ;;  %s2313_s25 = scalar_lea.sflag [#allocation5], %s317_s23 }
  0x27   : > { %v883_v56 = vld [vmem:[%s2201_s22] sm:$0xff]  ;;  %v884_v1 = vld [vmem:[%s2201_s22 + $0x8] sm:$0xff]  ;;  %v885_v11 = vld [vmem:[%s2201_s22 + $0x10] sm:$0xff]  ;;  %s2284_s17 = scalar_lea.vmem [#allocation4], %s1465_s30  ;;  %s1895_s30 = scalar_lea.vmem %s1894_s29, 4096 }
  0x28   : > { %1569 = vmatpush3.bf16.msra.mxu0 %v1851_v18  ;;  %v900_v62 = vmul.f32 %v2204_v57, %v883_v56  ;;  %v901_v8 = vmul.f32 %v2204_v57, %v884_v1  ;;  %v902_v18 = vmul.f32 %v2204_v57, %v885_v11 }
  0x29   : > { %1633 = vmatpush3.bf16.msra.mxu1 %v1852_v19  ;;  %1570 = vmatprep.subr.bf16.mxu0 %v1853_v20 }
  0x2a   : > { %1634 = vmatprep.subr.bf16.mxu1 %v1854_v21  ;;  %v886_v21 = vld [vmem:[%s2201_s22 + $0x18] sm:$0xff] }
  0x2c   : > { %1571 = vmatpush3.bf16.msra.mxu0 %v1855_v22 }
  0x2d   : > { %1635 = vmatpush3.bf16.msra.mxu1 %v1856_v23  ;;  %1572 = vmatprep.subr.bf16.mxu0 %v1857_v24 }
  0x2e   : > { %1636 = vmatprep.subr.bf16.mxu1 %v1858_v25 }
  0x30   : > { %1573 = vmatpush3.bf16.msra.mxu0 %v1859_v26 }
  0x31   : > { %1637 = vmatpush3.bf16.msra.mxu1 %v1860_v27  ;;  %1574 = vmatprep.subr.bf16.mxu0 %v1861_v28  ;;  %v903_v28 = vmul.f32 %v2204_v57, %v886_v21 }
  0x32   : > { %1638 = vmatprep.subr.bf16.mxu1 %v1862_v29 }
  0x34   : > { %1575 = vmatpush3.bf16.msra.mxu0 %v1863_v30 }
  0x35   : > { %1639 = vmatpush3.bf16.msra.mxu1 %v1864_v31  ;;  %1728 = vmatprep.subr.mxu0 %v935_v37  ;;  %v887_v31 = vld [vmem:[%s2201_s22 + $0x20] sm:$0xff] }
  0x36   : > { %1760 = vmatprep.subr.mxu1 %v1156_v52 }
  0x37   : > { %624 = vmatmul.mubr.bf16.vlgmr.msra.gmra.mxu0 %v1865_v32 }
  0x38   : > { %817 = vmatmul.mubr.bf16.vlgmr.msra.gmra.mxu1 %v1865_v32  ;;  %631 = vmatprep.mubr.bf16.mxu0 %v1868_v34 }
  0x39   : > { %824 = vmatprep.mubr.bf16.mxu1 %v1868_v34  ;;  %1729 = vmatpush3.msra.mxu0 %v935_v37 }
  0x3a   : > { %1730 = vmatprep.subr.mxu0 %v934_v38  ;;  %1761 = vmatpush3.msra.mxu1 %v1156_v52 }
  0x3b   : > { %1731 = vmatpush3.msra.mxu0 %v934_v38  ;;  %1762 = vmatprep.subr.mxu1 %v1155_v53  ;;  %v904_v38 = vmul.f32 %v2204_v57, %v887_v31 }
  0x3c   : > { %1732 = vmatprep.subr.mxu0 %v933_v50  ;;  %1763 = vmatpush3.msra.mxu1 %v1155_v53 }
  0x3d   : > { %1733 = vmatpush3.msra.mxu0 %v933_v50 }
  0x3e   : > { %1734 = vmatprep.subr.mxu0 %v932_v51 }
  0x3f   : > { %632 = vmatmul.mubr.bf16.gmra.mxu0 %v1870_v35 }
  0x40   : > { %825 = vmatmul.mubr.bf16.gmra.mxu1 %v1870_v35  ;;  %639 = vmatprep.mubr.bf16.mxu0 %v1871_v36 }
  0x41   : > { %832 = vmatprep.mubr.bf16.mxu1 %v1871_v36  ;;  %1735 = vmatpush3.msra.mxu0 %v932_v51  ;;  %v889_v51 = vld [vmem:[%s2201_s22 + $0x30] sm:$0xff] }
  0x47   : > { %640 = vmatmul.mubr.bf16.gmra.mxu0 %v1873_v39 }
  0x48   : > { %833 = vmatmul.mubr.bf16.gmra.mxu1 %v1873_v39  ;;  %647 = vmatprep.mubr.bf16.mxu0 %v1874_v40 }
  0x49   : > { %840 = vmatprep.mubr.bf16.mxu1 %v1874_v40 }
  0x4f   : > { %648 = vmatmul.mubr.bf16.gmra.mxu0 %v1876_v41 }
  0x50   : > { %841 = vmatmul.mubr.bf16.gmra.mxu1 %v1876_v41  ;;  %655 = vmatprep.mubr.bf16.mxu0 %v1877_v42  ;;  %v888_v41 = vld [vmem:[%s2201_s22 + $0x28] sm:$0xff] }
  0x51   : > { %848 = vmatprep.mubr.bf16.mxu1 %v1877_v42 }
  0x57   : > { %656 = vmatmul.mubr.bf16.gmra.mxu0 %v1879_v43 }
  0x58   : > { %849 = vmatmul.mubr.bf16.gmra.mxu1 %v1879_v43  ;;  %663 = vmatprep.mubr.bf16.mxu0 %v1880_v44 }
  0x59   : > { %856 = vmatprep.mubr.bf16.mxu1 %v1880_v44 }
  0x5f   : > { %664 = vmatmul.mubr.bf16.gmra.mxu0 %v1882_v45 }
  0x60   : > { %857 = vmatmul.mubr.bf16.gmra.mxu1 %v1882_v45  ;;  %671 = vmatprep.mubr.bf16.mxu0 %v1883_v46 }
  0x61   : > { %864 = vmatprep.mubr.bf16.mxu1 %v1883_v46 }
  0x67   : > { %672 = vmatmul.mubr.bf16.gmra.mxu0 %v1885_v47 }
  0x68   : > { %865 = vmatmul.mubr.bf16.gmra.mxu1 %v1885_v47  ;;  %679 = vmatprep.mubr.bf16.mxu0 %v1886_v48 }
  0x69   : > { %872 = vmatprep.mubr.bf16.mxu1 %v1886_v48  ;;  %v905_v48 = vmul.f32 %v2204_v57, %v888_v41 }
  0x6f   : > { %680 = vmatmul.mubr.bf16.gmra.mxu0 %v1888_v49 }
  0x70   : > { %873 = vmatmul.mubr.bf16.gmra.mxu1 %v1888_v49 }
  0xf7   : > { %v1576_v54 = vpop.f32.mrf.mxu0 }
  0xf8   : > { %v1640_v55 = vpop.f32.mrf.mxu1 }
  0xf9   : > { %v1577_v58 = vpop.f32.mrf.mxu0 }
  0xfa   : > { %v1641_v59 = vpop.f32.mrf.mxu1  ;;  %v1578_v60 = vadd.f32 %v1577_v58, %v1576_v54 }
  0xfb   : > { %v1642_v61 = vadd.f32 %v1641_v59, %v1640_v55  ;;  %v1579_v63 = vpop.f32.mrf.mxu0  ;;  %v906_v59 = vmul.f32 %v2204_v57, %v889_v51 }
  0xfc   : > { %v1643_v0 = vpop.f32.mrf.mxu1 }
  0xfd   : > { %v819_v2 = vadd.f32 %v1642_v61, %v1578_v60  ;;  %v1580_v3 = vpop.f32.mrf.mxu0 }
  0xfe   : > { %v1644_v4 = vpop.f32.mrf.mxu1  ;;  %v1581_v6 = vadd.f32 %v1580_v3, %v1579_v63 }
  0xff   : > { %v916_v5 = vadd.f32 %v900_v62, %v819_v2  ;;  %v1645_v7 = vadd.f32 %v1644_v4, %v1643_v0  ;;  %v1582_v9 = vpop.f32.mrf.mxu0  ;;  %v890_v62 = vld [vmem:[%s2201_s22 + $0x38] sm:$0xff] }
 0x100   : > { %v1646_v10 = vpop.f32.mrf.mxu1 }
 0x101   : > { %v822_v12 = vadd.f32 %v1645_v7, %v1581_v6  ;;  %1736 = vmatprep.mubr.msk.f32.mxu0 %vm943_vm0, %v916_v5  ;;  %v1583_v13 = vpop.f32.mrf.mxu0  ;;  %v907_v5 = vmul.f32 %v2204_v57, %v890_v62 }
 0x102   : > { %v1647_v14 = vpop.f32.mrf.mxu1  ;;  %v1584_v16 = vadd.f32 %v1583_v13, %v1582_v9 }
 0x103   : > { %v917_v15 = vadd.f32 %v901_v8, %v822_v12  ;;  %v1648_v17 = vadd.f32 %v1647_v14, %v1646_v10  ;;  %v1585_v19 = vpop.f32.mrf.mxu0  ;;  %v891_v8 = vld [vmem:[%s2201_s22 + $0x40] sm:$0xff] }
 0x104   : > { %v1649_v20 = vpop.f32.mrf.mxu1 }
 0x105   : > { %v827_v22 = vadd.f32 %v1648_v17, %v1584_v16  ;;  %1737 = vmatmul.mubr.msk.f32.vlgmr.msra.gmra.mxu0 %vm943_vm0, %v917_v15  ;;  %v1586_v23 = vpop.f32.mrf.mxu0  ;;  %v908_v15 = vmul.f32 %v2204_v57, %v891_v8 }
 0x106   : > { %v1650_v24 = vpop.f32.mrf.mxu1  ;;  %v1587_v26 = vadd.f32 %v1586_v23, %v1585_v19 }
 0x107   : > { %v918_v25 = vadd.f32 %v902_v18, %v827_v22  ;;  %v1651_v27 = vadd.f32 %v1650_v24, %v1649_v20  ;;  %v1588_v29 = vpop.f32.mrf.mxu0  ;;  %v892_v18 = vld [vmem:[%s2201_s22 + $0x48] sm:$0xff] }
 0x108   : > { %v1652_v30 = vpop.f32.mrf.mxu1 }
 0x109   : > { %v830_v32 = vadd.f32 %v1651_v27, %v1587_v26  ;;  %1739 = vmatprep.mubr.msk.f32.mxu0 %vm943_vm0, %v918_v25  ;;  %v1589_v33 = vpop.f32.mrf.mxu0  ;;  %v909_v25 = vmul.f32 %v2204_v57, %v892_v18 }
 0x10a   : > { %v1653_v34 = vpop.f32.mrf.mxu1  ;;  %v1590_v36 = vadd.f32 %v1589_v33, %v1588_v29 }
 0x10b   : > { %v919_v35 = vadd.f32 %v903_v28, %v830_v32  ;;  %v1654_v37 = vadd.f32 %v1653_v34, %v1652_v30  ;;  %v1591_v39 = vpop.f32.mrf.mxu0  ;;  %v893_v28 = vld [vmem:[%s2201_s22 + $0x50] sm:$0xff] }
 0x10c   : > { %v1655_v40 = vpop.f32.mrf.mxu1 }
 0x10d   : > { %v835_v42 = vadd.f32 %v1654_v37, %v1590_v36  ;;  %1740 = vmatmul.mubr.msk.f32.gmra.mxu0 %vm943_vm0, %v919_v35  ;;  %v1592_v43 = vpop.f32.mrf.mxu0  ;;  %v910_v35 = vmul.f32 %v2204_v57, %v893_v28 }
 0x10e   : > { %v1656_v44 = vpop.f32.mrf.mxu1  ;;  %v1593_v46 = vadd.f32 %v1592_v43, %v1591_v39 }
 0x10f   : > { %v920_v45 = vadd.f32 %v904_v38, %v835_v42  ;;  %v1657_v47 = vadd.f32 %v1656_v44, %v1655_v40  ;;  %v1594_v49 = vpop.f32.mrf.mxu0  ;;  %v894_v38 = vld [vmem:[%s2201_s22 + $0x58] sm:$0xff] }
 0x110   : > { %v1658_v50 = vpop.f32.mrf.mxu1 }
 0x111   : > { %v838_v52 = vadd.f32 %v1657_v47, %v1593_v46  ;;  %1742 = vmatprep.mubr.msk.f32.mxu0 %vm943_vm0, %v920_v45  ;;  %v1595_v53 = vpop.f32.mrf.mxu0  ;;  %v911_v45 = vmul.f32 %v2204_v57, %v894_v38 }
 0x112   : > { %v1659_v54 = vpop.f32.mrf.mxu1  ;;  %v1596_v56 = vadd.f32 %v1595_v53, %v1594_v49 }
 0x113   : > { %v921_v55 = vadd.f32 %v905_v48, %v838_v52  ;;  %v1660_v58 = vadd.f32 %v1659_v54, %v1658_v50  ;;  %v1597_v60 = vpop.f32.mrf.mxu0  ;;  %v895_v48 = vld [vmem:[%s2201_s22 + $0x60] sm:$0xff] }
 0x114   : > { %v1661_v61 = vpop.f32.mrf.mxu1 }
 0x115   : > { %v843_v63 = vadd.f32 %v1660_v58, %v1596_v56  ;;  %1743 = vmatmul.mubr.msk.f32.gmra.mxu0 %vm943_vm0, %v921_v55  ;;  %v1598_v0 = vpop.f32.mrf.mxu0  ;;  %v912_v55 = vmul.f32 %v2204_v57, %v895_v48 }
 0x116   : > { %v1662_v1 = vpop.f32.mrf.mxu1  ;;  %v1599_v3 = vadd.f32 %v1598_v0, %v1597_v60 }
 0x117   : > { %v922_v2 = vadd.f32 %v906_v59, %v843_v63  ;;  %v1663_v4 = vadd.f32 %v1662_v1, %v1661_v61  ;;  %v1600_v6 = vpop.f32.mrf.mxu0  ;;  %v896_v59 = vld [vmem:[%s2201_s22 + $0x68] sm:$0xff] }
 0x118   : > { %v1664_v7 = vpop.f32.mrf.mxu1 }
 0x119   : > { %v846_v9 = vadd.f32 %v1663_v4, %v1599_v3  ;;  %1745 = vmatprep.mubr.msk.f32.mxu0 %vm943_vm0, %v922_v2  ;;  %v1601_v10 = vpop.f32.mrf.mxu0  ;;  %v913_v2 = vmul.f32 %v2204_v57, %v896_v59 }
 0x11a   : > { %v1665_v11 = vpop.f32.mrf.mxu1  ;;  %v1602_v13 = vadd.f32 %v1601_v10, %v1600_v6 }
 0x11b   : > { %v923_v12 = vadd.f32 %v907_v5, %v846_v9  ;;  %v1666_v14 = vadd.f32 %v1665_v11, %v1664_v7  ;;  %v1603_v16 = vpop.f32.mrf.mxu0  ;;  %v897_v5 = vld [vmem:[%s2201_s22 + $0x70] sm:$0xff] }
 0x11c   : > { %v1667_v17 = vpop.f32.mrf.mxu1 }
 0x11d   : > { %v851_v19 = vadd.f32 %v1666_v14, %v1602_v13  ;;  %1746 = vmatmul.mubr.msk.f32.gmra.mxu0 %vm943_vm0, %v923_v12  ;;  %v1604_v20 = vpop.f32.mrf.mxu0  ;;  %v914_v12 = vmul.f32 %v2204_v57, %v897_v5 }
 0x11e   : > { %v1668_v21 = vpop.f32.mrf.mxu1  ;;  %v1605_v23 = vadd.f32 %v1604_v20, %v1603_v16 }
 0x11f   : > { %v924_v22 = vadd.f32 %v908_v15, %v851_v19  ;;  %v1669_v24 = vadd.f32 %v1668_v21, %v1667_v17  ;;  %v1606_v26 = vpop.f32.mrf.mxu0  ;;  %v898_v15 = vld [vmem:[%s2201_s22 + $0x78] sm:$0xff]  ;;  %s1387_s22 = sshll.u32 %s2284_s17, 4  ;;  %s2307_s22 = int_to_ptr.vmem [resolvable:$true] %s1387_s22 }
 0x120   : > { %v1670_v27 = vpop.f32.mrf.mxu1  ;;  %s1889_s0 = scalar_lea.vmem %s2307_s22, 2048  ;;  %p1896_p0 = scmp.lt.s32.totalorder %s2307_s22, %s1894_s29 }
 0x121   : > { %v854_v29 = vadd.f32 %v1669_v24, %v1605_v23  ;;  %1748 = vmatprep.mubr.msk.f32.mxu0 %vm943_vm0, %v924_v22  ;;  %v1607_v30 = vpop.f32.mrf.mxu0  ;;  %v915_v22 = vmul.f32 %v2204_v57, %v898_v15  ;;  %v1519_v57 = vld [vmem:[%s2359_s6] ss:$0 sm:$0xff]  ;;  %p1890_p11 = scmp.ne.s32.totalorder %s2307_s22, %s1889_s0  ;;  %p1897_p1 = scmp.lt.s32.totalorder %s1895_s30, %s1889_s0 }
 0x122   : > { %v1671_v31 = vpop.f32.mrf.mxu1  ;;  %v1608_v33 = vadd.f32 %v1607_v30, %v1606_v26  ;;  %v1153_v26 = vld [vmem:[%s2360_s7] sm:$0xff] }
 0x123   : > { %v925_v32 = vadd.f32 %v909_v25, %v854_v29  ;;  %v1672_v34 = vadd.f32 %v1671_v31, %v1670_v27  ;;  %v1609_v36 = vpop.f32.mrf.mxu0  ;;  %v1154_v25 = vld [vmem:[%s2360_s7 + $0x8] sm:$0xff]  ;;  %p1891_p12 = pnand %p1890_p11, %p2045_p5  ;;  %p1898_p2 = por %p1897_p1, %p1896_p0 }
 0x124   : > { %v1673_v37 = vpop.f32.mrf.mxu1  ;;  %1764 = vmatprep.subr.mxu1 %v1154_v25 }
 0x125   : > { %v859_v39 = vadd.f32 %v1672_v34, %v1608_v33  ;;  %1749 = vmatmul.mubr.msk.f32.gmra.mxu0 %vm943_vm0, %v925_v32  ;;  %v1610_v40 = vpop.f32.mrf.mxu0  ;;  %1765 = vmatpush3.msra.mxu1 %v1154_v25  ;;  %p1892_p13 = pneg %p1891_p12 }
 0x126   : > { %v1674_v41 = vpop.f32.mrf.mxu1  ;;  %v1611_v43 = vadd.f32 %v1610_v40, %v1609_v36  ;;  %1766 = vmatprep.subr.mxu1 %v1153_v26 }
 0x127   : > { %v926_v42 = vadd.f32 %v910_v35, %v859_v39  ;;  %v1675_v44 = vadd.f32 %v1674_v41, %v1673_v37  ;;  %v1612_v46 = vpop.f32.mrf.mxu0  ;;  %1767 = vmatpush3.msra.mxu1 %v1153_v26  ;;  %p1899_p3 = pnand %p1898_p2, %p1892_p13 }
 0x128   : > { %v1676_v47 = vpop.f32.mrf.mxu1 }
 0x129   : > { %v862_v49 = vadd.f32 %v1675_v44, %v1611_v43  ;;  %1751 = vmatprep.mubr.msk.f32.mxu0 %vm943_vm0, %v926_v42  ;;  %v1613_v50 = vpop.f32.mrf.mxu0 }
 0x12a   : > { %v1677_v51 = vpop.f32.mrf.mxu1  ;;  %v1614_v53 = vadd.f32 %v1613_v50, %v1612_v46 }
 0x12b   : > { %v927_v52 = vadd.f32 %v911_v45, %v862_v49  ;;  %v1678_v54 = vadd.f32 %v1677_v51, %v1676_v47  ;;  %v1615_v56 = vpop.f32.mrf.mxu0 }
 0x12c   : > { %v1679_v58 = vpop.f32.mrf.mxu1 }
 0x12d   : > { %v867_v60 = vadd.f32 %v1678_v54, %v1614_v53  ;;  %1752 = vmatmul.mubr.msk.f32.gmra.mxu0 %vm943_vm0, %v927_v52  ;;  %v1616_v61 = vpop.f32.mrf.mxu0 }
 0x12e   : > { %v1680_v62 = vpop.f32.mrf.mxu1  ;;  %v1617_v0 = vadd.f32 %v1616_v61, %v1615_v56 }
 0x12f   : > { %v928_v63 = vadd.f32 %v912_v55, %v867_v60  ;;  %v1681_v1 = vadd.f32 %v1680_v62, %v1679_v58  ;;  %v1618_v3 = vpop.f32.mrf.mxu0 }
 0x130   : > { %v1682_v4 = vpop.f32.mrf.mxu1 }
 0x131   : > { %v870_v6 = vadd.f32 %v1681_v1, %v1617_v0  ;;  %1754 = vmatprep.mubr.msk.f32.mxu0 %vm943_vm0, %v928_v63  ;;  %v1619_v7 = vpop.f32.mrf.mxu0 }
 0x132   : > { %v1683_v8 = vpop.f32.mrf.mxu1  ;;  %v1620_v10 = vadd.f32 %v1619_v7, %v1618_v3 }
 0x133   : > { %v929_v9 = vadd.f32 %v913_v2, %v870_v6  ;;  %v1684_v11 = vadd.f32 %v1683_v8, %v1682_v4  ;;  %v1621_v13 = vpop.f32.mrf.mxu0 }
 0x134   : > { %v1685_v14 = vpop.f32.mrf.mxu1 }
 0x135   : > { %v875_v16 = vadd.f32 %v1684_v11, %v1620_v10  ;;  %1755 = vmatmul.mubr.msk.f32.gmra.mxu0 %vm943_vm0, %v929_v9  ;;  %v1622_v17 = vpop.f32.mrf.mxu0 }
 0x136   : > { %v1686_v18 = vpop.f32.mrf.mxu1  ;;  %v1623_v20 = vadd.f32 %v1622_v17, %v1621_v13 }
 0x137   : > { %v930_v19 = vadd.f32 %v914_v12, %v875_v16  ;;  %v1687_v21 = vadd.f32 %v1686_v18, %v1685_v14  ;;  %v1536_v12 = vld [vmem:[%s2361_s8] ss:$0 sm:$0xff] }
 0x139   : > { %v878_v23 = vadd.f32 %v1687_v21, %v1623_v20  ;;  %1757 = vmatprep.mubr.msk.f32.mxu0 %vm943_vm0, %v930_v19 }
 0x13b   : > { %v931_v24 = vadd.f32 %v915_v22, %v878_v23 }
 0x13d   : > { %1758 = vmatmul.mubr.msk.f32.gmra.mxu0 %vm943_vm0, %v931_v24 }
 0x1c5   : > { %v1738_v27 = vpop.f32.mrf.mxu0 }
 0x1c6   : > { %v1064_v28 = vadd.f32 %v1738_v27, %v1519_v57 }
 0x1c7   : > { %v1058_v29 = vpop.f32.mrf.mxu0 }
 0x1c8   : > { %v1059_v30 = vadd.f32 %v1519_v57, %v1058_v29  ;;  %v1138_v32 = vmax.f32 %v1064_v28, 0.0 }
 0x1ca   : > { %v1137_v31 = vmax.f32 %v1059_v30, 0.0 }
 0x1cc   : > { %1768 = vmatprep.mubr.msk.f32.mxu1 %vm943_vm0, %v1137_v31 }
 0x1cd   : > { %v1741_v33 = vpop.f32.mrf.mxu0  ;;  %1769 = vmatmul.mubr.msk.f32.vlgmr.msra.gmra.mxu1 %vm943_vm0, %v1138_v32 }
 0x1ce   : > { %v1074_v34 = vadd.f32 %v1741_v33, %v1519_v57 }
 0x1cf   : > { %v1068_v35 = vpop.f32.mrf.mxu0 }
 0x1d0   : > { %v1069_v36 = vadd.f32 %v1519_v57, %v1068_v35  ;;  %v1140_v38 = vmax.f32 %v1074_v34, 0.0 }
 0x1d2   : > { %v1139_v37 = vmax.f32 %v1069_v36, 0.0 }
 0x1d4   : > { %1771 = vmatprep.mubr.msk.f32.mxu1 %vm943_vm0, %v1139_v37 }
 0x1d5   : > { %v1744_v39 = vpop.f32.mrf.mxu0  ;;  %1772 = vmatmul.mubr.msk.f32.gmra.mxu1 %vm943_vm0, %v1140_v38 }
 0x1d6   : > { %v1084_v40 = vadd.f32 %v1744_v39, %v1519_v57 }
 0x1d7   : > { %v1078_v41 = vpop.f32.mrf.mxu0 }
 0x1d8   : > { %v1079_v42 = vadd.f32 %v1519_v57, %v1078_v41  ;;  %v1142_v44 = vmax.f32 %v1084_v40, 0.0 }
 0x1da   : > { %v1141_v43 = vmax.f32 %v1079_v42, 0.0 }
 0x1dc   : > { %1774 = vmatprep.mubr.msk.f32.mxu1 %vm943_vm0, %v1141_v43 }
 0x1dd   : > { %v1747_v45 = vpop.f32.mrf.mxu0  ;;  %1775 = vmatmul.mubr.msk.f32.gmra.mxu1 %vm943_vm0, %v1142_v44 }
 0x1de   : > { %v1094_v46 = vadd.f32 %v1747_v45, %v1519_v57 }
 0x1df   : > { %v1088_v47 = vpop.f32.mrf.mxu0 }
 0x1e0   : > { %v1089_v48 = vadd.f32 %v1519_v57, %v1088_v47  ;;  %v1144_v50 = vmax.f32 %v1094_v46, 0.0 }
 0x1e2   : > { %v1143_v49 = vmax.f32 %v1089_v48, 0.0 }
 0x1e4   : > { %1777 = vmatprep.mubr.msk.f32.mxu1 %vm943_vm0, %v1143_v49 }
 0x1e5   : > { %v1750_v51 = vpop.f32.mrf.mxu0  ;;  %1778 = vmatmul.mubr.msk.f32.gmra.mxu1 %vm943_vm0, %v1144_v50 }
 0x1e6   : > { %v1104_v52 = vadd.f32 %v1750_v51, %v1519_v57 }
 0x1e7   : > { %v1098_v53 = vpop.f32.mrf.mxu0 }
 0x1e8   : > { %v1099_v54 = vadd.f32 %v1519_v57, %v1098_v53  ;;  %v1146_v56 = vmax.f32 %v1104_v52, 0.0 }
 0x1ea   : > { %v1145_v55 = vmax.f32 %v1099_v54, 0.0 }
 0x1ec   : > { %1780 = vmatprep.mubr.msk.f32.mxu1 %vm943_vm0, %v1145_v55 }
 0x1ed   : > { %v1753_v58 = vpop.f32.mrf.mxu0  ;;  %1781 = vmatmul.mubr.msk.f32.gmra.mxu1 %vm943_vm0, %v1146_v56 }
 0x1ee   : > { %v1114_v59 = vadd.f32 %v1753_v58, %v1519_v57 }
 0x1ef   : > { %v1108_v60 = vpop.f32.mrf.mxu0 }
 0x1f0   : > { %v1109_v61 = vadd.f32 %v1519_v57, %v1108_v60  ;;  %v1148_v63 = vmax.f32 %v1114_v59, 0.0 }
 0x1f2   : > { %v1147_v62 = vmax.f32 %v1109_v61, 0.0 }
 0x1f4   : > { %1783 = vmatprep.mubr.msk.f32.mxu1 %vm943_vm0, %v1147_v62 }
 0x1f5   : > { %v1756_v0 = vpop.f32.mrf.mxu0  ;;  %1784 = vmatmul.mubr.msk.f32.gmra.mxu1 %vm943_vm0, %v1148_v63 }
 0x1f6   : > { %v1124_v1 = vadd.f32 %v1756_v0, %v1519_v57 }
 0x1f7   : > { %v1118_v2 = vpop.f32.mrf.mxu0 }
 0x1f8   : > { %v1119_v3 = vadd.f32 %v1519_v57, %v1118_v2  ;;  %v1150_v5 = vmax.f32 %v1124_v1, 0.0 }
 0x1fa   : > { %v1149_v4 = vmax.f32 %v1119_v3, 0.0 }
 0x1fc   : > { %1786 = vmatprep.mubr.msk.f32.mxu1 %vm943_vm0, %v1149_v4 }
 0x1fd   : > { %v1759_v6 = vpop.f32.mrf.mxu0  ;;  %1787 = vmatmul.mubr.msk.f32.gmra.mxu1 %vm943_vm0, %v1150_v5 }
 0x1fe   : > { %v1134_v7 = vadd.f32 %v1759_v6, %v1519_v57 }
 0x1ff   : > { %v1128_v8 = vpop.f32.mrf.mxu0 }
 0x200   : > { %v1129_v9 = vadd.f32 %v1519_v57, %v1128_v8  ;;  %v1152_v11 = vmax.f32 %v1134_v7, 0.0 }
 0x202   : > { %v1151_v10 = vmax.f32 %v1129_v9, 0.0 }
 0x204   : > { %1789 = vmatprep.mubr.msk.f32.mxu1 %vm943_vm0, %v1151_v10 }
 0x205   : > { %1790 = vmatmul.mubr.msk.f32.gmra.mxu1 %vm943_vm0, %v1152_v11 }
 0x28d   : > { %v1770_v13 = vpop.f32.mrf.mxu1 }
 0x28e   : > { %v1284_v14 = vadd.f32 %v1770_v13, %v1536_v12 }
 0x28f   : > { %v1278_v15 = vpop.f32.mrf.mxu1 }
 0x290   : > { %1358 = vst [vmem:[%s2284_s17 + $0x8] sm:$0xff] %v1284_v14  ;;  %v1279_v16 = vadd.f32 %v1536_v12, %v1278_v15 }
 0x292   : > { %1357 = vst [vmem:[%s2284_s17] sm:$0xff] %v1279_v16 }
 0x295   : > { %v1773_v17 = vpop.f32.mrf.mxu1 }
 0x296   : > { %v1294_v18 = vadd.f32 %v1773_v17, %v1536_v12 }
 0x297   : > { %v1288_v19 = vpop.f32.mrf.mxu1 }
 0x298   : > { %1360 = vst [vmem:[%s2284_s17 + $0x18] sm:$0xff] %v1294_v18  ;;  %v1289_v20 = vadd.f32 %v1536_v12, %v1288_v19 }
 0x29a   : > { %1359 = vst [vmem:[%s2284_s17 + $0x10] sm:$0xff] %v1289_v20 }
 0x29d   : > { %v1776_v21 = vpop.f32.mrf.mxu1 }
 0x29e   : > { %v1304_v22 = vadd.f32 %v1776_v21, %v1536_v12 }
 0x29f   : > { %v1298_v23 = vpop.f32.mrf.mxu1 }
 0x2a0   : > { %1362 = vst [vmem:[%s2284_s17 + $0x28] sm:$0xff] %v1304_v22  ;;  %v1299_v24 = vadd.f32 %v1536_v12, %v1298_v23 }
 0x2a2   : > { %1361 = vst [vmem:[%s2284_s17 + $0x20] sm:$0xff] %v1299_v24 }
 0x2a5   : > { %v1779_v25 = vpop.f32.mrf.mxu1 }
 0x2a6   : > { %v1314_v26 = vadd.f32 %v1779_v25, %v1536_v12 }
 0x2a7   : > { %v1308_v57 = vpop.f32.mrf.mxu1 }
 0x2a8   : > { %1364 = vst [vmem:[%s2284_s17 + $0x38] sm:$0xff] %v1314_v26  ;;  %v1309_v27 = vadd.f32 %v1536_v12, %v1308_v57 }
 0x2aa   : > { %1363 = vst [vmem:[%s2284_s17 + $0x30] sm:$0xff] %v1309_v27 }
 0x2ad   : > { %v1782_v28 = vpop.f32.mrf.mxu1 }
 0x2ae   : > { %v1324_v29 = vadd.f32 %v1782_v28, %v1536_v12 }
 0x2af   : > { %v1318_v30 = vpop.f32.mrf.mxu1 }
 0x2b0   : > { %1366 = vst [vmem:[%s2284_s17 + $0x48] sm:$0xff] %v1324_v29  ;;  %v1319_v31 = vadd.f32 %v1536_v12, %v1318_v30 }
 0x2b2   : > { %1365 = vst [vmem:[%s2284_s17 + $0x40] sm:$0xff] %v1319_v31 }
 0x2b5   : > { %v1785_v32 = vpop.f32.mrf.mxu1 }
 0x2b6   : > { %v1334_v33 = vadd.f32 %v1785_v32, %v1536_v12 }
 0x2b7   : > { %v1328_v34 = vpop.f32.mrf.mxu1 }
 0x2b8   : > { %1368 = vst [vmem:[%s2284_s17 + $0x58] sm:$0xff] %v1334_v33  ;;  %v1329_v35 = vadd.f32 %v1536_v12, %v1328_v34 }
 0x2ba   : > { %1367 = vst [vmem:[%s2284_s17 + $0x50] sm:$0xff] %v1329_v35 }
 0x2bd   : > { %v1788_v36 = vpop.f32.mrf.mxu1 }
 0x2be   : > { %v1344_v37 = vadd.f32 %v1788_v36, %v1536_v12 }
 0x2bf   : > { %v1338_v38 = vpop.f32.mrf.mxu1 }
 0x2c0   : > { %1370 = vst [vmem:[%s2284_s17 + $0x68] sm:$0xff] %v1344_v37  ;;  %v1339_v39 = vadd.f32 %v1536_v12, %v1338_v38 }
 0x2c2   : > { %1369 = vst [vmem:[%s2284_s17 + $0x60] sm:$0xff] %v1339_v39 }
 0x2c5   : > { %v1791_v40 = vpop.f32.mrf.mxu1 }
 0x2c6   : > { %v1354_v41 = vadd.f32 %v1791_v40, %v1536_v12 }
 0x2c7   : > { %v1348_v42 = vpop.f32.mrf.mxu1 }
 0x2c8   : > { %1372 = vst [vmem:[%s2284_s17 + $0x78] sm:$0xff] %v1354_v41  ;;  %v1349_v43 = vadd.f32 %v1536_v12, %v1348_v42 }
 0x2ca   : > { %1371 = vst [vmem:[%s2284_s17 + $0x70] sm:$0xff] %v1349_v43 }
 0x2cb   : > { %1902 = shalt.err (!%p1899_p3)
}
 0x2cc   : > { %s1903_s23 = scalar_lea.hbm %s2305_s24, 2048  ;;  %s1907_s17 = scalar_lea.hbm %s2362_s9, 4096 }
 0x2cd   : > { %p1904_p4 = scmp.ne.s32.totalorder %s2305_s24, %s1903_s23  ;;  %p1908_p9 = scmp.lt.s32.totalorder %s2305_s24, %s2362_s9 }
 0x2ce   : > { %p1909_p10 = scmp.lt.s32.totalorder %s1907_s17, %s1903_s23 }
 0x2cf   : > { %p1905_p7 = pnand %p1904_p4, %p2045_p5 }
 0x2d0   : > { %p1910_p11 = por %p1909_p10, %p1908_p9 }
 0x2d1   : > { %p1906_p8 = pneg %p1905_p7 }
 0x2d3   : > { %p1911_p12 = pnand %p1910_p11, %p1906_p8 }
 0x2d5   : > { %1914 = shalt.err (!%p1911_p12)
}
 0x2d6   : > { %s1952_s26 = smov 128   ;;  %s1953_s0 = smov 8  }
 0x2d7   : > { %1792 = dma.vmem_to_hbm [thread:$0]  (%p2045_p5), %s2307_s22, 2048, %s2305_s24, %s2313_s25, %s1952_s26, %s1952_s26, %s1953_s0  }
 0x2d8 PF: > { %p1798_p13 = scmp.ge.s32.totalorder %s1949_s14, 2  ;;  %s1402_s27 = sand.u32 1, %s1937_s11  }
 0x2d9   : > { %s1403_s29 = scalar_lea.sflag [#allocation5], %s1402_s27 }
 0x2da   : > { %p1795_p0 = pnand %p1798_p13, %p2049_p6 }
 0x2dc   : > { %p1796_p1 = pneg %p1795_p0 }
 0x2de   : > { %1932 = dma.done.wait (%p1796_p1), %s1403_s29, 2048  }
 0x2df   : > { %1934 = vsyncadd (%p1796_p1), %s1403_s29, 4294965248  ;;  %p20_p2 = scmp.ge.s32.totalorder %s2032_s16, 4   ;;  %s2365_s11 = smov %s1941_s12 }
 0x2e0   : > { %s2366_s12 = smov %s1945_s13  ;;  %s2367_s13 = smov %s2043_s19 }
 0x2e1   : > { %s2368_s14 = smov %s2032_s16  ;;  %22 = sbr.rel (!%p20_p2) target bundleno = 5 (0x5), region = 90 }
 0x2e6   :  { %1408 = vsyncpa [#allocation5], 1 }
 0x2e7   :  { %1410 = vsyncpa [#allocation5 + $0x1], 1 }

</bundles_post_ra>
